<compile_context>
chip_gen: v6e
topology: v6e:2x2x1
jax: 0.10.0
libtpu: 0.0.40
codegen_flags: <defaults>
</compile_context>

<pallas_src>
import functools
import math

import jax
import jax.numpy as jnp
from jax import lax
from jax.experimental import pallas as pl
from jax.experimental.pallas import tpu as pltpu


# ----------------------------------------------------------------------------
# Pallas kernel: full BiRNN forward (LSTM stack + fc on last step + batchnorm).
# ----------------------------------------------------------------------------
def _birnn_kernel(num_layers, hidden_size, seq_len, batch, batch_pad, bn_last,
                  x_ref, *refs):
    H = hidden_size
    T = seq_len
    B = batch          # real batch rows (used for fc / BN)
    Bp = batch_pad     # sublane-padded batch rows used inside the recurrence

    n_p = 3 * num_layers + 2
    p = refs[:n_p]
    out_ref = refs[n_p]
    xw_ref = refs[n_p + 1]                       # (T*Bp, 4H) hoisted gate pre-activations
    seq_bufs = (refs[n_p + 2], refs[n_p + 3])    # (T*Bp, H) inter-layer ping-pong buffers

    # Gate columns are laid out [i | f | o | g] (reordered in the wrapper): lanes >= 3H
    # take tanh, the rest sigmoid. Mask hoisted once — outside all loops.
    g_mask = lax.broadcasted_iota(jnp.int32, (Bp, 4 * H), 1) >= 3 * H

    unroll = T if T <= 8 else 4   # (on v5e consider capping at 4 if spills appear)

    h_last = None
    for l in range(num_layers):
        w_ih_t = p[3 * l + 0][...]   # (Din, 4H)  — pre-transposed / gate-reordered
        w_hh_t = p[3 * l + 1][...]   # (H,   4H)
        bias = p[3 * l + 2][...]     # (1,   4H)  == b_ih + b_hh, gate-reordered

        in_ref = x_ref if l == 0 else seq_bufs[(l - 1) % 2]

        # --- hoisted x-path: one big MXU matmul for ALL timesteps + single bias add ---
        xw_ref[...] = (
            jnp.dot(in_ref[...], w_ih_t, preferred_element_type=jnp.float32) + bias
        )

        # Only intermediate layers need to materialize their full output sequence.
        write_buf = seq_bufs[l % 2] if l < num_layers - 1 else None

        def step(t, carry, _w_hh_t=w_hh_t, _write_buf=write_buf):
            h, c = carry
            row = pl.multiple_of(t * Bp, Bp)
            gates = xw_ref[pl.ds(row, Bp), :] + jnp.dot(
                h, _w_hh_t, preferred_element_type=jnp.float32
            )
            # Full-vreg activations (2 EUP pushes) + lane-mask blend, then static slices.
            act = jnp.where(g_mask, jnp.tanh(gates), jax.nn.sigmoid(gates))
            i_g = act[:, 0 * H:1 * H]
            f_g = act[:, 1 * H:2 * H]
            o_g = act[:, 2 * H:3 * H]
            g_g = act[:, 3 * H:4 * H]
            c = f_g * c + i_g * g_g
            h = o_g * jnp.tanh(c)
            if _write_buf is not None:
                _write_buf[pl.ds(row, Bp), :] = h
            return (h, c)

        h0 = jnp.zeros((Bp, H), jnp.float32)
        c0 = jnp.zeros((Bp, H), jnp.float32)
        h_last, _ = lax.fori_loop(0, T, step, (h0, c0), unroll=unroll)

    # fc on the last timestep's hidden state (real batch rows only)
    fc_w_t = p[3 * num_layers + 0][...]   # (H, xdim)
    fc_b = p[3 * num_layers + 1][...]     # (1, xdim)
    h_real = h_last[:B, :]
    out = jnp.dot(h_real, fc_w_t, preferred_element_type=jnp.float32) + fc_b

    if bn_last:
        # BatchNorm1d(affine=False), training-mode batch statistics (biased var), eps=1e-5
        mean = jnp.mean(out, axis=0, keepdims=True)
        var = jnp.mean((out - mean) ** 2, axis=0, keepdims=True)
        out = (out - mean) * lax.rsqrt(var + 1e-5)

    out_ref[...] = out.astype(out_ref.dtype)


# ----------------------------------------------------------------------------
# Parameter preprocessing (once, outside the hot path): transpose + gate-reorder.
# PyTorch gate order along 4H is [i | f | g | o]; kernel wants [i | f | o | g].
# ----------------------------------------------------------------------------
def _reorder_gates(a):
    i, f, g, o = jnp.split(a, 4, axis=-1)
    return jnp.concatenate([i, f, o, g], axis=-1)


def prepare_params(params, *, num_layers):
    flat = []
    for l in range(num_layers):
        flat.append(_reorder_gates(jnp.asarray(params[f"w_ih_{l}"], jnp.float32).T))  # (Din, 4H)
        flat.append(_reorder_gates(jnp.asarray(params[f"w_hh_{l}"], jnp.float32).T))  # (H,   4H)
        flat.append(_reorder_gates(jnp.asarray(params[f"b_{l}"], jnp.float32)))       # (1,   4H)
    flat.append(jnp.asarray(params["fc_w"], jnp.float32).T)                            # (H, xdim)
    flat.append(jnp.asarray(params["fc_b"], jnp.float32))                              # (1, xdim)
    return tuple(flat)


# ----------------------------------------------------------------------------
# Jitted wrapper: stages x time-major / batch-padded, allocates VMEM scratch,
# and launches a single-program pallas_call.
# ----------------------------------------------------------------------------
@functools.partial(jax.jit,
                   static_argnames=("hidden_size", "num_layers", "xdim", "bn_last"))
def birnn_forward(x, prepped_params, *, hidden_size, num_layers, xdim, bn_last=True):
    B, T, Din = x.shape
    H = hidden_size
    Bp = ((B + 7) // 8) * 8   # pad batch to a multiple of 8 sublanes

    xf = x.astype(jnp.float32)
    if Bp != B:
        xf = jnp.pad(xf, ((0, Bp - B), (0, 0), (0, 0)))
    # time-major, flattened to 2D: row t*Bp + b  <->  (batch b, time t)
    x2d = jnp.transpose(xf, (1, 0, 2)).reshape(T * Bp, Din)

    flat = (x2d,) + tuple(prepped_params)

    # Right-size the scoped VMEM limit (4x headroom, clamped under v7x's 64 MiB).
    scratch_bytes = (T * Bp * 4 * H + 2 * T * Bp * H) * 4
    io_bytes = 4 * (T * Bp * Din + B * xdim) + sum(int(a.size) * 4 for a in prepped_params)
    vmem_limit = int(min(48 * 1024 * 1024,
                         max(8 * 1024 * 1024, 4 * (scratch_bytes + io_bytes))))

    kernel = functools.partial(_birnn_kernel, num_layers, H, T, B, Bp, bn_last)
    vmem_spec = pl.BlockSpec(memory_space=pltpu.MemorySpace.VMEM)

    return pl.pallas_call(
        kernel,
        out_shape=jax.ShapeDtypeStruct((B, xdim), jnp.float32),
        in_specs=[vmem_spec] * len(flat),
        out_specs=vmem_spec,
        scratch_shapes=[
            pltpu.VMEM((T * Bp, 4 * H), jnp.float32),   # hoisted gate pre-activations
            pltpu.VMEM((T * Bp, H), jnp.float32),       # inter-layer sequence (ping)
            pltpu.VMEM((T * Bp, H), jnp.float32),       # inter-layer sequence (pong)
        ],
        compiler_params=pltpu.CompilerParams(vmem_limit_bytes=vmem_limit),
    )(*flat)


# ----------------------------------------------------------------------------
# Deterministic parameter init (same shapes / uniform(-1/sqrt(H), 1/sqrt(H)) as PyTorch)
# ----------------------------------------------------------------------------
def init_params(key, input_size, hidden_size, num_layers, xdim):
    H = hidden_size
    bound = 1.0 / math.sqrt(H)
    params = {}
    keys = jax.random.split(key, 4 * num_layers + 2)
    ki = 0
    for l in range(num_layers):
        din = input_size if l == 0 else H
        params[f"w_ih_{l}"] = jax.random.uniform(keys[ki], (4 * H, din), jnp.float32, -bound, bound); ki += 1
        params[f"w_hh_{l}"] = jax.random.uniform(keys[ki], (4 * H, H), jnp.float32, -bound, bound); ki += 1
        b_ih = jax.random.uniform(keys[ki], (4 * H,), jnp.float32, -bound, bound); ki += 1
        b_hh = jax.random.uniform(keys[ki], (4 * H,), jnp.float32, -bound, bound); ki += 1
        params[f"b_{l}"] = (b_ih + b_hh).reshape(1, 4 * H)
    params["fc_w"] = jax.random.uniform(keys[ki], (xdim, H), jnp.float32, -bound, bound); ki += 1
    params["fc_b"] = jax.random.uniform(keys[ki], (xdim,), jnp.float32, -bound, bound).reshape(1, xdim)
    return params


# ----------------------------------------------------------------------------
# Pure-JAX reference (PyTorch semantics, original [i|f|g|o] gate order).
# ----------------------------------------------------------------------------
def birnn_reference(x, params, *, hidden_size, num_layers, bn_last=True):
    B, T, _ = x.shape
    H = hidden_size
    seq = x.astype(jnp.float32)
    h = None
    for l in range(num_layers):
        w_ih = params[f"w_ih_{l}"]
        w_hh = params[f"w_hh_{l}"]
        b = params[f"b_{l}"]
        h = jnp.zeros((B, H), jnp.float32)
        c = jnp.zeros((B, H), jnp.float32)
        outs = []
        for t in range(T):
            gates = seq[:, t, :] @ w_ih.T + h @ w_hh.T + b
            i = jax.nn.sigmoid(gates[:, 0 * H:1 * H])
            f = jax.nn.sigmoid(gates[:, 1 * H:2 * H])
            g = jnp.tanh(gates[:, 2 * H:3 * H])
            o = jax.nn.sigmoid(gates[:, 3 * H:4 * H])
            c = f * c + i * g
            h = o * jnp.tanh(c)
            outs.append(h)
        seq = jnp.stack(outs, axis=1)
    out = h @ params["fc_w"].T + params["fc_b"]
    if bn_last:
        mean = jnp.mean(out, axis=0, keepdims=True)
        var = jnp.mean((out - mean) ** 2, axis=0, keepdims=True)
        out = (out - mean) * lax.rsqrt(var + 1e-5)
    return out


if __name__ == "__main__":
    # Small shapes consistent with the module's forward: x is (batch, T, input_size)
    batch, T = 2, 8
    input_size, hidden_size, num_layers, xdim = 4, 32, 2, 4

    key = jax.random.PRNGKey(0)
    kx, kp = jax.random.split(key)
    x = jax.random.normal(kx, (batch, T, input_size), jnp.float32)
    params = init_params(kp, input_size, hidden_size, num_layers, xdim)

    # Preprocess params once (transpose / gate-reorder), then run the jitted kernel.
    prepped = jax.tree_util.tree_map(jax.block_until_ready,
                                     prepare_params(params, num_layers=num_layers))
    out = birnn_forward(x, prepped, hidden_size=hidden_size, num_layers=num_layers,
                        xdim=xdim, bn_last=True)
    out = jax.block_until_ready(out)

    ref = jax.block_until_ready(
        birnn_reference(x, params, hidden_size=hidden_size, num_layers=num_layers, bn_last=True))
    assert out.shape == (batch, xdim)
    assert jnp.allclose(out, ref, atol=1e-2, rtol=1e-2)

    print("KERNEL_OK")
</pallas_src>

<mosaic_0001>
module attributes {stable_mosaic.version = 11 : i64} {
  func.func @_birnn_kernel(%arg0: memref<64x4xf32, #tpu.memory_space<vmem>>, %arg1: memref<4x128xf32, #tpu.memory_space<vmem>>, %arg2: memref<32x128xf32, #tpu.memory_space<vmem>>, %arg3: memref<1x128xf32, #tpu.memory_space<vmem>>, %arg4: memref<32x128xf32, #tpu.memory_space<vmem>>, %arg5: memref<32x128xf32, #tpu.memory_space<vmem>>, %arg6: memref<1x128xf32, #tpu.memory_space<vmem>>, %arg7: memref<32x4xf32, #tpu.memory_space<vmem>>, %arg8: memref<1x4xf32, #tpu.memory_space<vmem>>, %arg9: memref<2x4xf32, #tpu.memory_space<vmem>>, %arg10: memref<64x128xf32, #tpu.memory_space<vmem>>, %arg11: memref<64x32xf32, #tpu.memory_space<vmem>>, %arg12: memref<64x32xf32, #tpu.memory_space<vmem>>) attributes {dimension_semantics = [], scalar_prefetch = 0 : i64, scratch_operands = 3 : i64, tpu.core_type = #tpu.core_type<tc>} {
    %0 = tpu.iota {dimensions = array<i32: 1>} : vector<8x128xi32>
    %c96_i32 = arith.constant 96 : i32
    %1 = vector.broadcast %c96_i32 : i32 to vector<8x128xi32>
    %2 = arith.cmpi sge, %0, %1 : vector<8x128xi32>
    %c0 = arith.constant 0 : index
    %c0_0 = arith.constant 0 : index
    %3 = vector.load %arg1[%c0, %c0_0] : memref<4x128xf32, #tpu.memory_space<vmem>>, vector<4x128xf32>
    %c0_1 = arith.constant 0 : index
    %c0_2 = arith.constant 0 : index
    %4 = vector.load %arg2[%c0_1, %c0_2] : memref<32x128xf32, #tpu.memory_space<vmem>>, vector<32x128xf32>
    %c0_3 = arith.constant 0 : index
    %c0_4 = arith.constant 0 : index
    %5 = vector.load %arg3[%c0_3, %c0_4] : memref<1x128xf32, #tpu.memory_space<vmem>>, vector<1x128xf32>
    %c0_5 = arith.constant 0 : index
    %c0_6 = arith.constant 0 : index
    %6 = vector.load %arg0[%c0_5, %c0_6] : memref<64x4xf32, #tpu.memory_space<vmem>>, vector<64x4xf32>
    %cst = arith.constant dense<0.000000e+00> : vector<64x128xf32>
    %7 = tpu.matmul %6, %3, %cst {dimension_numbers = #tpu.dot_dimension_numbers<[1], [0], [0], [1], [0, 0, 1, 1], [], []>} : vector<64x4xf32>, vector<4x128xf32>, vector<64x128xf32> -> vector<64x128xf32>
    %8 = vector.broadcast %5 : vector<1x128xf32> to vector<64x128xf32>
    %9 = arith.addf %7, %8 : vector<64x128xf32>
    %c0_7 = arith.constant 0 : index
    %c0_8 = arith.constant 0 : index
    %10 = vector.load %arg10[%c0_7, %c0_8] : memref<64x128xf32, #tpu.memory_space<vmem>>, vector<64x128xf32>
    tpu.vector_store %arg10[%c0_7, %c0_8], %9 {strides = array<i32>} : memref<64x128xf32, #tpu.memory_space<vmem>>, vector<64x128xf32>,
    %cst_9 = arith.constant 0.000000e+00 : f32
    %11 = vector.broadcast %cst_9 : f32 to vector<8x32xf32>
    %cst_10 = arith.constant 0.000000e+00 : f32
    %12 = vector.broadcast %cst_10 : f32 to vector<8x32xf32>
    %c0_i32 = arith.constant 0 : i32
    %c8_i32 = arith.constant 8 : i32
    %13 = arith.muli %c0_i32, %c8_i32 : i32
    %14 = tpu.assume_multiple %13, 8 : i32
    %15 = arith.index_cast %14 : i32 to index
    %c0_11 = arith.constant 0 : index
    %16 = vector.load %arg10[%15, %c0_11] : memref<64x128xf32, #tpu.memory_space<vmem>>, vector<8x128xf32>
    %cst_12 = arith.constant dense<0.000000e+00> : vector<8x128xf32>
    %17 = tpu.matmul %11, %4, %cst_12 {dimension_numbers = #tpu.dot_dimension_numbers<[1], [0], [0], [1], [0, 0, 1, 1], [], []>} : vector<8x32xf32>, vector<32x128xf32>, vector<8x128xf32> -> vector<8x128xf32>
    %18 = arith.addf %16, %17 : vector<8x128xf32>
    %19 = math.tanh %18 : vector<8x128xf32>
    %20 = arith.negf %18 : vector<8x128xf32>
    %21 = math.exp %20 : vector<8x128xf32>
    %cst_13 = arith.constant 1.000000e+00 : f32
    %22 = vector.broadcast %cst_13 : f32 to vector<8x128xf32>
    %23 = arith.addf %22, %21 : vector<8x128xf32>
    %24 = arith.divf %22, %23 : vector<8x128xf32>
    %25 = arith.select %2, %19, %24 : vector<8x128xi1>, vector<8x128xf32>
    %26 = vector.extract_strided_slice %25 {offsets = [0, 0], sizes = [8, 32], strides = [1, 1]} : vector<8x128xf32> to vector<8x32xf32>
    %27 = vector.extract_strided_slice %25 {offsets = [0, 32], sizes = [8, 32], strides = [1, 1]} : vector<8x128xf32> to vector<8x32xf32>
    %28 = vector.extract_strided_slice %25 {offsets = [0, 64], sizes = [8, 32], strides = [1, 1]} : vector<8x128xf32> to vector<8x32xf32>
    %29 = vector.extract_strided_slice %25 {offsets = [0, 96], sizes = [8, 32], strides = [1, 1]} : vector<8x128xf32> to vector<8x32xf32>
    %30 = arith.mulf %27, %12 : vector<8x32xf32>
    %31 = arith.mulf %26, %29 : vector<8x32xf32>
    %32 = arith.addf %30, %31 : vector<8x32xf32>
    %33 = math.tanh %32 : vector<8x32xf32>
    %34 = arith.mulf %28, %33 : vector<8x32xf32>
    %35 = arith.index_cast %14 : i32 to index
    %c0_14 = arith.constant 0 : index
    %36 = vector.load %arg11[%35, %c0_14] : memref<64x32xf32, #tpu.memory_space<vmem>>, vector<8x32xf32>
    tpu.vector_store %arg11[%35, %c0_14], %34 {strides = array<i32>} : memref<64x32xf32, #tpu.memory_space<vmem>>, vector<8x32xf32>,
    %c1_i32 = arith.constant 1 : i32
    %c8_i32_15 = arith.constant 8 : i32
    %37 = arith.muli %c1_i32, %c8_i32_15 : i32
    %38 = tpu.assume_multiple %37, 8 : i32
    %39 = arith.index_cast %38 : i32 to index
    %c0_16 = arith.constant 0 : index
    %40 = vector.load %arg10[%39, %c0_16] : memref<64x128xf32, #tpu.memory_space<vmem>>, vector<8x128xf32>
    %cst_17 = arith.constant dense<0.000000e+00> : vector<8x128xf32>
    %41 = tpu.matmul %34, %4, %cst_17 {dimension_numbers = #tpu.dot_dimension_numbers<[1], [0], [0], [1], [0, 0, 1, 1], [], []>} : vector<8x32xf32>, vector<32x128xf32>, vector<8x128xf32> -> vector<8x128xf32>
    %42 = arith.addf %40, %41 : vector<8x128xf32>
    %43 = math.tanh %42 : vector<8x128xf32>
    %44 = arith.negf %42 : vector<8x128xf32>
    %45 = math.exp %44 : vector<8x128xf32>
    %cst_18 = arith.constant 1.000000e+00 : f32
    %46 = vector.broadcast %cst_18 : f32 to vector<8x128xf32>
    %47 = arith.addf %46, %45 : vector<8x128xf32>
    %48 = arith.divf %46, %47 : vector<8x128xf32>
    %49 = arith.select %2, %43, %48 : vector<8x128xi1>, vector<8x128xf32>
    %50 = vector.extract_strided_slice %49 {offsets = [0, 0], sizes = [8, 32], strides = [1, 1]} : vector<8x128xf32> to vector<8x32xf32>
    %51 = vector.extract_strided_slice %49 {offsets = [0, 32], sizes = [8, 32], strides = [1, 1]} : vector<8x128xf32> to vector<8x32xf32>
    %52 = vector.extract_strided_slice %49 {offsets = [0, 64], sizes = [8, 32], strides = [1, 1]} : vector<8x128xf32> to vector<8x32xf32>
    %53 = vector.extract_strided_slice %49 {offsets = [0, 96], sizes = [8, 32], strides = [1, 1]} : vector<8x128xf32> to vector<8x32xf32>
    %54 = arith.mulf %51, %32 : vector<8x32xf32>
    %55 = arith.mulf %50, %53 : vector<8x32xf32>
    %56 = arith.addf %54, %55 : vector<8x32xf32>
    %57 = math.tanh %56 : vector<8x32xf32>
    %58 = arith.mulf %52, %57 : vector<8x32xf32>
    %59 = arith.index_cast %38 : i32 to index
    %c0_19 = arith.constant 0 : index
    %60 = vector.load %arg11[%59, %c0_19] : memref<64x32xf32, #tpu.memory_space<vmem>>, vector<8x32xf32>
    tpu.vector_store %arg11[%59, %c0_19], %58 {strides = array<i32>} : memref<64x32xf32, #tpu.memory_space<vmem>>, vector<8x32xf32>,
    %c2_i32 = arith.constant 2 : i32
    %c8_i32_20 = arith.constant 8 : i32
    %61 = arith.muli %c2_i32, %c8_i32_20 : i32
    %62 = tpu.assume_multiple %61, 8 : i32
    %63 = arith.index_cast %62 : i32 to index
    %c0_21 = arith.constant 0 : index
    %64 = vector.load %arg10[%63, %c0_21] : memref<64x128xf32, #tpu.memory_space<vmem>>, vector<8x128xf32>
    %cst_22 = arith.constant dense<0.000000e+00> : vector<8x128xf32>
    %65 = tpu.matmul %58, %4, %cst_22 {dimension_numbers = #tpu.dot_dimension_numbers<[1], [0], [0], [1], [0, 0, 1, 1], [], []>} : vector<8x32xf32>, vector<32x128xf32>, vector<8x128xf32> -> vector<8x128xf32>
    %66 = arith.addf %64, %65 : vector<8x128xf32>
    %67 = math.tanh %66 : vector<8x128xf32>
    %68 = arith.negf %66 : vector<8x128xf32>
    %69 = math.exp %68 : vector<8x128xf32>
    %cst_23 = arith.constant 1.000000e+00 : f32
    %70 = vector.broadcast %cst_23 : f32 to vector<8x128xf32>
    %71 = arith.addf %70, %69 : vector<8x128xf32>
    %72 = arith.divf %70, %71 : vector<8x128xf32>
    %73 = arith.select %2, %67, %72 : vector<8x128xi1>, vector<8x128xf32>
    %74 = vector.extract_strided_slice %73 {offsets = [0, 0], sizes = [8, 32], strides = [1, 1]} : vector<8x128xf32> to vector<8x32xf32>
    %75 = vector.extract_strided_slice %73 {offsets = [0, 32], sizes = [8, 32], strides = [1, 1]} : vector<8x128xf32> to vector<8x32xf32>
    %76 = vector.extract_strided_slice %73 {offsets = [0, 64], sizes = [8, 32], strides = [1, 1]} : vector<8x128xf32> to vector<8x32xf32>
    %77 = vector.extract_strided_slice %73 {offsets = [0, 96], sizes = [8, 32], strides = [1, 1]} : vector<8x128xf32> to vector<8x32xf32>
    %78 = arith.mulf %75, %56 : vector<8x32xf32>
    %79 = arith.mulf %74, %77 : vector<8x32xf32>
    %80 = arith.addf %78, %79 : vector<8x32xf32>
    %81 = math.tanh %80 : vector<8x32xf32>
    %82 = arith.mulf %76, %81 : vector<8x32xf32>
    %83 = arith.index_cast %62 : i32 to index
    %c0_24 = arith.constant 0 : index
    %84 = vector.load %arg11[%83, %c0_24] : memref<64x32xf32, #tpu.memory_space<vmem>>, vector<8x32xf32>
    tpu.vector_store %arg11[%83, %c0_24], %82 {strides = array<i32>} : memref<64x32xf32, #tpu.memory_space<vmem>>, vector<8x32xf32>,
    %c3_i32 = arith.constant 3 : i32
    %c8_i32_25 = arith.constant 8 : i32
    %85 = arith.muli %c3_i32, %c8_i32_25 : i32
    %86 = tpu.assume_multiple %85, 8 : i32
    %87 = arith.index_cast %86 : i32 to index
    %c0_26 = arith.constant 0 : index
    %88 = vector.load %arg10[%87, %c0_26] : memref<64x128xf32, #tpu.memory_space<vmem>>, vector<8x128xf32>
    %cst_27 = arith.constant dense<0.000000e+00> : vector<8x128xf32>
    %89 = tpu.matmul %82, %4, %cst_27 {dimension_numbers = #tpu.dot_dimension_numbers<[1], [0], [0], [1], [0, 0, 1, 1], [], []>} : vector<8x32xf32>, vector<32x128xf32>, vector<8x128xf32> -> vector<8x128xf32>
    %90 = arith.addf %88, %89 : vector<8x128xf32>
    %91 = math.tanh %90 : vector<8x128xf32>
    %92 = arith.negf %90 : vector<8x128xf32>
    %93 = math.exp %92 : vector<8x128xf32>
    %cst_28 = arith.constant 1.000000e+00 : f32
    %94 = vector.broadcast %cst_28 : f32 to vector<8x128xf32>
    %95 = arith.addf %94, %93 : vector<8x128xf32>
    %96 = arith.divf %94, %95 : vector<8x128xf32>
    %97 = arith.select %2, %91, %96 : vector<8x128xi1>, vector<8x128xf32>
    %98 = vector.extract_strided_slice %97 {offsets = [0, 0], sizes = [8, 32], strides = [1, 1]} : vector<8x128xf32> to vector<8x32xf32>
    %99 = vector.extract_strided_slice %97 {offsets = [0, 32], sizes = [8, 32], strides = [1, 1]} : vector<8x128xf32> to vector<8x32xf32>
    %100 = vector.extract_strided_slice %97 {offsets = [0, 64], sizes = [8, 32], strides = [1, 1]} : vector<8x128xf32> to vector<8x32xf32>
    %101 = vector.extract_strided_slice %97 {offsets = [0, 96], sizes = [8, 32], strides = [1, 1]} : vector<8x128xf32> to vector<8x32xf32>
    %102 = arith.mulf %99, %80 : vector<8x32xf32>
    %103 = arith.mulf %98, %101 : vector<8x32xf32>
    %104 = arith.addf %102, %103 : vector<8x32xf32>
    %105 = math.tanh %104 : vector<8x32xf32>
    %106 = arith.mulf %100, %105 : vector<8x32xf32>
    %107 = arith.index_cast %86 : i32 to index
    %c0_29 = arith.constant 0 : index
    %108 = vector.load %arg11[%107, %c0_29] : memref<64x32xf32, #tpu.memory_space<vmem>>, vector<8x32xf32>
    tpu.vector_store %arg11[%107, %c0_29], %106 {strides = array<i32>} : memref<64x32xf32, #tpu.memory_space<vmem>>, vector<8x32xf32>,
    %c4_i32 = arith.constant 4 : i32
    %c8_i32_30 = arith.constant 8 : i32
    %109 = arith.muli %c4_i32, %c8_i32_30 : i32
    %110 = tpu.assume_multiple %109, 8 : i32
    %111 = arith.index_cast %110 : i32 to index
    %c0_31 = arith.constant 0 : index
    %112 = vector.load %arg10[%111, %c0_31] : memref<64x128xf32, #tpu.memory_space<vmem>>, vector<8x128xf32>
    %cst_32 = arith.constant dense<0.000000e+00> : vector<8x128xf32>
    %113 = tpu.matmul %106, %4, %cst_32 {dimension_numbers = #tpu.dot_dimension_numbers<[1], [0], [0], [1], [0, 0, 1, 1], [], []>} : vector<8x32xf32>, vector<32x128xf32>, vector<8x128xf32> -> vector<8x128xf32>
    %114 = arith.addf %112, %113 : vector<8x128xf32>
    %115 = math.tanh %114 : vector<8x128xf32>
    %116 = arith.negf %114 : vector<8x128xf32>
    %117 = math.exp %116 : vector<8x128xf32>
    %cst_33 = arith.constant 1.000000e+00 : f32
    %118 = vector.broadcast %cst_33 : f32 to vector<8x128xf32>
    %119 = arith.addf %118, %117 : vector<8x128xf32>
    %120 = arith.divf %118, %119 : vector<8x128xf32>
    %121 = arith.select %2, %115, %120 : vector<8x128xi1>, vector<8x128xf32>
    %122 = vector.extract_strided_slice %121 {offsets = [0, 0], sizes = [8, 32], strides = [1, 1]} : vector<8x128xf32> to vector<8x32xf32>
    %123 = vector.extract_strided_slice %121 {offsets = [0, 32], sizes = [8, 32], strides = [1, 1]} : vector<8x128xf32> to vector<8x32xf32>
    %124 = vector.extract_strided_slice %121 {offsets = [0, 64], sizes = [8, 32], strides = [1, 1]} : vector<8x128xf32> to vector<8x32xf32>
    %125 = vector.extract_strided_slice %121 {offsets = [0, 96], sizes = [8, 32], strides = [1, 1]} : vector<8x128xf32> to vector<8x32xf32>
    %126 = arith.mulf %123, %104 : vector<8x32xf32>
    %127 = arith.mulf %122, %125 : vector<8x32xf32>
    %128 = arith.addf %126, %127 : vector<8x32xf32>
    %129 = math.tanh %128 : vector<8x32xf32>
    %130 = arith.mulf %124, %129 : vector<8x32xf32>
    %131 = arith.index_cast %110 : i32 to index
    %c0_34 = arith.constant 0 : index
    %132 = vector.load %arg11[%131, %c0_34] : memref<64x32xf32, #tpu.memory_space<vmem>>, vector<8x32xf32>
    tpu.vector_store %arg11[%131, %c0_34], %130 {strides = array<i32>} : memref<64x32xf32, #tpu.memory_space<vmem>>, vector<8x32xf32>,
    %c5_i32 = arith.constant 5 : i32
    %c8_i32_35 = arith.constant 8 : i32
    %133 = arith.muli %c5_i32, %c8_i32_35 : i32
    %134 = tpu.assume_multiple %133, 8 : i32
    %135 = arith.index_cast %134 : i32 to index
    %c0_36 = arith.constant 0 : index
    %136 = vector.load %arg10[%135, %c0_36] : memref<64x128xf32, #tpu.memory_space<vmem>>, vector<8x128xf32>
    %cst_37 = arith.constant dense<0.000000e+00> : vector<8x128xf32>
    %137 = tpu.matmul %130, %4, %cst_37 {dimension_numbers = #tpu.dot_dimension_numbers<[1], [0], [0], [1], [0, 0, 1, 1], [], []>} : vector<8x32xf32>, vector<32x128xf32>, vector<8x128xf32> -> vector<8x128xf32>
    %138 = arith.addf %136, %137 : vector<8x128xf32>
    %139 = math.tanh %138 : vector<8x128xf32>
    %140 = arith.negf %138 : vector<8x128xf32>
    %141 = math.exp %140 : vector<8x128xf32>
    %cst_38 = arith.constant 1.000000e+00 : f32
    %142 = vector.broadcast %cst_38 : f32 to vector<8x128xf32>
    %143 = arith.addf %142, %141 : vector<8x128xf32>
    %144 = arith.divf %142, %143 : vector<8x128xf32>
    %145 = arith.select %2, %139, %144 : vector<8x128xi1>, vector<8x128xf32>
    %146 = vector.extract_strided_slice %145 {offsets = [0, 0], sizes = [8, 32], strides = [1, 1]} : vector<8x128xf32> to vector<8x32xf32>
    %147 = vector.extract_strided_slice %145 {offsets = [0, 32], sizes = [8, 32], strides = [1, 1]} : vector<8x128xf32> to vector<8x32xf32>
    %148 = vector.extract_strided_slice %145 {offsets = [0, 64], sizes = [8, 32], strides = [1, 1]} : vector<8x128xf32> to vector<8x32xf32>
    %149 = vector.extract_strided_slice %145 {offsets = [0, 96], sizes = [8, 32], strides = [1, 1]} : vector<8x128xf32> to vector<8x32xf32>
    %150 = arith.mulf %147, %128 : vector<8x32xf32>
    %151 = arith.mulf %146, %149 : vector<8x32xf32>
    %152 = arith.addf %150, %151 : vector<8x32xf32>
    %153 = math.tanh %152 : vector<8x32xf32>
    %154 = arith.mulf %148, %153 : vector<8x32xf32>
    %155 = arith.index_cast %134 : i32 to index
    %c0_39 = arith.constant 0 : index
    %156 = vector.load %arg11[%155, %c0_39] : memref<64x32xf32, #tpu.memory_space<vmem>>, vector<8x32xf32>
    tpu.vector_store %arg11[%155, %c0_39], %154 {strides = array<i32>} : memref<64x32xf32, #tpu.memory_space<vmem>>, vector<8x32xf32>,
    %c6_i32 = arith.constant 6 : i32
    %c8_i32_40 = arith.constant 8 : i32
    %157 = arith.muli %c6_i32, %c8_i32_40 : i32
    %158 = tpu.assume_multiple %157, 8 : i32
    %159 = arith.index_cast %158 : i32 to index
    %c0_41 = arith.constant 0 : index
    %160 = vector.load %arg10[%159, %c0_41] : memref<64x128xf32, #tpu.memory_space<vmem>>, vector<8x128xf32>
    %cst_42 = arith.constant dense<0.000000e+00> : vector<8x128xf32>
    %161 = tpu.matmul %154, %4, %cst_42 {dimension_numbers = #tpu.dot_dimension_numbers<[1], [0], [0], [1], [0, 0, 1, 1], [], []>} : vector<8x32xf32>, vector<32x128xf32>, vector<8x128xf32> -> vector<8x128xf32>
    %162 = arith.addf %160, %161 : vector<8x128xf32>
    %163 = math.tanh %162 : vector<8x128xf32>
    %164 = arith.negf %162 : vector<8x128xf32>
    %165 = math.exp %164 : vector<8x128xf32>
    %cst_43 = arith.constant 1.000000e+00 : f32
    %166 = vector.broadcast %cst_43 : f32 to vector<8x128xf32>
    %167 = arith.addf %166, %165 : vector<8x128xf32>
    %168 = arith.divf %166, %167 : vector<8x128xf32>
    %169 = arith.select %2, %163, %168 : vector<8x128xi1>, vector<8x128xf32>
    %170 = vector.extract_strided_slice %169 {offsets = [0, 0], sizes = [8, 32], strides = [1, 1]} : vector<8x128xf32> to vector<8x32xf32>
    %171 = vector.extract_strided_slice %169 {offsets = [0, 32], sizes = [8, 32], strides = [1, 1]} : vector<8x128xf32> to vector<8x32xf32>
    %172 = vector.extract_strided_slice %169 {offsets = [0, 64], sizes = [8, 32], strides = [1, 1]} : vector<8x128xf32> to vector<8x32xf32>
    %173 = vector.extract_strided_slice %169 {offsets = [0, 96], sizes = [8, 32], strides = [1, 1]} : vector<8x128xf32> to vector<8x32xf32>
    %174 = arith.mulf %171, %152 : vector<8x32xf32>
    %175 = arith.mulf %170, %173 : vector<8x32xf32>
    %176 = arith.addf %174, %175 : vector<8x32xf32>
    %177 = math.tanh %176 : vector<8x32xf32>
    %178 = arith.mulf %172, %177 : vector<8x32xf32>
    %179 = arith.index_cast %158 : i32 to index
    %c0_44 = arith.constant 0 : index
    %180 = vector.load %arg11[%179, %c0_44] : memref<64x32xf32, #tpu.memory_space<vmem>>, vector<8x32xf32>
    tpu.vector_store %arg11[%179, %c0_44], %178 {strides = array<i32>} : memref<64x32xf32, #tpu.memory_space<vmem>>, vector<8x32xf32>,
    %c7_i32 = arith.constant 7 : i32
    %c8_i32_45 = arith.constant 8 : i32
    %181 = arith.muli %c7_i32, %c8_i32_45 : i32
    %182 = tpu.assume_multiple %181, 8 : i32
    %183 = arith.index_cast %182 : i32 to index
    %c0_46 = arith.constant 0 : index
    %184 = vector.load %arg10[%183, %c0_46] : memref<64x128xf32, #tpu.memory_space<vmem>>, vector<8x128xf32>
    %cst_47 = arith.constant dense<0.000000e+00> : vector<8x128xf32>
    %185 = tpu.matmul %178, %4, %cst_47 {dimension_numbers = #tpu.dot_dimension_numbers<[1], [0], [0], [1], [0, 0, 1, 1], [], []>} : vector<8x32xf32>, vector<32x128xf32>, vector<8x128xf32> -> vector<8x128xf32>
    %186 = arith.addf %184, %185 : vector<8x128xf32>
    %187 = math.tanh %186 : vector<8x128xf32>
    %188 = arith.negf %186 : vector<8x128xf32>
    %189 = math.exp %188 : vector<8x128xf32>
    %cst_48 = arith.constant 1.000000e+00 : f32
    %190 = vector.broadcast %cst_48 : f32 to vector<8x128xf32>
    %191 = arith.addf %190, %189 : vector<8x128xf32>
    %192 = arith.divf %190, %191 : vector<8x128xf32>
    %193 = arith.select %2, %187, %192 : vector<8x128xi1>, vector<8x128xf32>
    %194 = vector.extract_strided_slice %193 {offsets = [0, 0], sizes = [8, 32], strides = [1, 1]} : vector<8x128xf32> to vector<8x32xf32>
    %195 = vector.extract_strided_slice %193 {offsets = [0, 32], sizes = [8, 32], strides = [1, 1]} : vector<8x128xf32> to vector<8x32xf32>
    %196 = vector.extract_strided_slice %193 {offsets = [0, 64], sizes = [8, 32], strides = [1, 1]} : vector<8x128xf32> to vector<8x32xf32>
    %197 = vector.extract_strided_slice %193 {offsets = [0, 96], sizes = [8, 32], strides = [1, 1]} : vector<8x128xf32> to vector<8x32xf32>
    %198 = arith.mulf %195, %176 : vector<8x32xf32>
    %199 = arith.mulf %194, %197 : vector<8x32xf32>
    %200 = arith.addf %198, %199 : vector<8x32xf32>
    %201 = math.tanh %200 : vector<8x32xf32>
    %202 = arith.mulf %196, %201 : vector<8x32xf32>
    %203 = arith.index_cast %182 : i32 to index
    %c0_49 = arith.constant 0 : index
    %204 = vector.load %arg11[%203, %c0_49] : memref<64x32xf32, #tpu.memory_space<vmem>>, vector<8x32xf32>
    tpu.vector_store %arg11[%203, %c0_49], %202 {strides = array<i32>} : memref<64x32xf32, #tpu.memory_space<vmem>>, vector<8x32xf32>,
    %c8_i32_50 = arith.constant 8 : i32
    %c0_51 = arith.constant 0 : index
    %c0_52 = arith.constant 0 : index
    %205 = vector.load %arg4[%c0_51, %c0_52] : memref<32x128xf32, #tpu.memory_space<vmem>>, vector<32x128xf32>
    %c0_53 = arith.constant 0 : index
    %c0_54 = arith.constant 0 : index
    %206 = vector.load %arg5[%c0_53, %c0_54] : memref<32x128xf32, #tpu.memory_space<vmem>>, vector<32x128xf32>
    %c0_55 = arith.constant 0 : index
    %c0_56 = arith.constant 0 : index
    %207 = vector.load %arg6[%c0_55, %c0_56] : memref<1x128xf32, #tpu.memory_space<vmem>>, vector<1x128xf32>
    %c0_57 = arith.constant 0 : index
    %c0_58 = arith.constant 0 : index
    %208 = vector.load %arg11[%c0_57, %c0_58] : memref<64x32xf32, #tpu.memory_space<vmem>>, vector<64x32xf32>
    %cst_59 = arith.constant dense<0.000000e+00> : vector<64x128xf32>
    %209 = tpu.matmul %208, %205, %cst_59 {dimension_numbers = #tpu.dot_dimension_numbers<[1], [0], [0], [1], [0, 0, 1, 1], [], []>} : vector<64x32xf32>, vector<32x128xf32>, vector<64x128xf32> -> vector<64x128xf32>
    %210 = vector.broadcast %207 : vector<1x128xf32> to vector<64x128xf32>
    %211 = arith.addf %209, %210 : vector<64x128xf32>
    %c0_60 = arith.constant 0 : index
    %c0_61 = arith.constant 0 : index
    %212 = vector.load %arg10[%c0_60, %c0_61] : memref<64x128xf32, #tpu.memory_space<vmem>>, vector<64x128xf32>
    tpu.vector_store %arg10[%c0_60, %c0_61], %211 {strides = array<i32>} : memref<64x128xf32, #tpu.memory_space<vmem>>, vector<64x128xf32>,
    %cst_62 = arith.constant 0.000000e+00 : f32
    %213 = vector.broadcast %cst_62 : f32 to vector<8x32xf32>
    %cst_63 = arith.constant 0.000000e+00 : f32
    %214 = vector.broadcast %cst_63 : f32 to vector<8x32xf32>
    %c0_i32_64 = arith.constant 0 : i32
    %c8_i32_65 = arith.constant 8 : i32
    %215 = arith.muli %c0_i32_64, %c8_i32_65 : i32
    %216 = tpu.assume_multiple %215, 8 : i32
    %217 = arith.index_cast %216 : i32 to index
    %c0_66 = arith.constant 0 : index
    %218 = vector.load %arg10[%217, %c0_66] : memref<64x128xf32, #tpu.memory_space<vmem>>, vector<8x128xf32>
    %cst_67 = arith.constant dense<0.000000e+00> : vector<8x128xf32>
    %219 = tpu.matmul %213, %206, %cst_67 {dimension_numbers = #tpu.dot_dimension_numbers<[1], [0], [0], [1], [0, 0, 1, 1], [], []>} : vector<8x32xf32>, vector<32x128xf32>, vector<8x128xf32> -> vector<8x128xf32>
    %220 = arith.addf %218, %219 : vector<8x128xf32>
    %221 = math.tanh %220 : vector<8x128xf32>
    %222 = arith.negf %220 : vector<8x128xf32>
    %223 = math.exp %222 : vector<8x128xf32>
    %cst_68 = arith.constant 1.000000e+00 : f32
    %224 = vector.broadcast %cst_68 : f32 to vector<8x128xf32>
    %225 = arith.addf %224, %223 : vector<8x128xf32>
    %226 = arith.divf %224, %225 : vector<8x128xf32>
    %227 = arith.select %2, %221, %226 : vector<8x128xi1>, vector<8x128xf32>
    %228 = vector.extract_strided_slice %227 {offsets = [0, 0], sizes = [8, 32], strides = [1, 1]} : vector<8x128xf32> to vector<8x32xf32>
    %229 = vector.extract_strided_slice %227 {offsets = [0, 32], sizes = [8, 32], strides = [1, 1]} : vector<8x128xf32> to vector<8x32xf32>
    %230 = vector.extract_strided_slice %227 {offsets = [0, 64], sizes = [8, 32], strides = [1, 1]} : vector<8x128xf32> to vector<8x32xf32>
    %231 = vector.extract_strided_slice %227 {offsets = [0, 96], sizes = [8, 32], strides = [1, 1]} : vector<8x128xf32> to vector<8x32xf32>
    %232 = arith.mulf %229, %214 : vector<8x32xf32>
    %233 = arith.mulf %228, %231 : vector<8x32xf32>
    %234 = arith.addf %232, %233 : vector<8x32xf32>
    %235 = math.tanh %234 : vector<8x32xf32>
    %236 = arith.mulf %230, %235 : vector<8x32xf32>
    %c1_i32_69 = arith.constant 1 : i32
    %c8_i32_70 = arith.constant 8 : i32
    %237 = arith.muli %c1_i32_69, %c8_i32_70 : i32
    %238 = tpu.assume_multiple %237, 8 : i32
    %239 = arith.index_cast %238 : i32 to index
    %c0_71 = arith.constant 0 : index
    %240 = vector.load %arg10[%239, %c0_71] : memref<64x128xf32, #tpu.memory_space<vmem>>, vector<8x128xf32>
    %cst_72 = arith.constant dense<0.000000e+00> : vector<8x128xf32>
    %241 = tpu.matmul %236, %206, %cst_72 {dimension_numbers = #tpu.dot_dimension_numbers<[1], [0], [0], [1], [0, 0, 1, 1], [], []>} : vector<8x32xf32>, vector<32x128xf32>, vector<8x128xf32> -> vector<8x128xf32>
    %242 = arith.addf %240, %241 : vector<8x128xf32>
    %243 = math.tanh %242 : vector<8x128xf32>
    %244 = arith.negf %242 : vector<8x128xf32>
    %245 = math.exp %244 : vector<8x128xf32>
    %cst_73 = arith.constant 1.000000e+00 : f32
    %246 = vector.broadcast %cst_73 : f32 to vector<8x128xf32>
    %247 = arith.addf %246, %245 : vector<8x128xf32>
    %248 = arith.divf %246, %247 : vector<8x128xf32>
    %249 = arith.select %2, %243, %248 : vector<8x128xi1>, vector<8x128xf32>
    %250 = vector.extract_strided_slice %249 {offsets = [0, 0], sizes = [8, 32], strides = [1, 1]} : vector<8x128xf32> to vector<8x32xf32>
    %251 = vector.extract_strided_slice %249 {offsets = [0, 32], sizes = [8, 32], strides = [1, 1]} : vector<8x128xf32> to vector<8x32xf32>
    %252 = vector.extract_strided_slice %249 {offsets = [0, 64], sizes = [8, 32], strides = [1, 1]} : vector<8x128xf32> to vector<8x32xf32>
    %253 = vector.extract_strided_slice %249 {offsets = [0, 96], sizes = [8, 32], strides = [1, 1]} : vector<8x128xf32> to vector<8x32xf32>
    %254 = arith.mulf %251, %234 : vector<8x32xf32>
    %255 = arith.mulf %250, %253 : vector<8x32xf32>
    %256 = arith.addf %254, %255 : vector<8x32xf32>
    %257 = math.tanh %256 : vector<8x32xf32>
    %258 = arith.mulf %252, %257 : vector<8x32xf32>
    %c2_i32_74 = arith.constant 2 : i32
    %c8_i32_75 = arith.constant 8 : i32
    %259 = arith.muli %c2_i32_74, %c8_i32_75 : i32
    %260 = tpu.assume_multiple %259, 8 : i32
    %261 = arith.index_cast %260 : i32 to index
    %c0_76 = arith.constant 0 : index
    %262 = vector.load %arg10[%261, %c0_76] : memref<64x128xf32, #tpu.memory_space<vmem>>, vector<8x128xf32>
    %cst_77 = arith.constant dense<0.000000e+00> : vector<8x128xf32>
    %263 = tpu.matmul %258, %206, %cst_77 {dimension_numbers = #tpu.dot_dimension_numbers<[1], [0], [0], [1], [0, 0, 1, 1], [], []>} : vector<8x32xf32>, vector<32x128xf32>, vector<8x128xf32> -> vector<8x128xf32>
    %264 = arith.addf %262, %263 : vector<8x128xf32>
    %265 = math.tanh %264 : vector<8x128xf32>
    %266 = arith.negf %264 : vector<8x128xf32>
    %267 = math.exp %266 : vector<8x128xf32>
    %cst_78 = arith.constant 1.000000e+00 : f32
    %268 = vector.broadcast %cst_78 : f32 to vector<8x128xf32>
    %269 = arith.addf %268, %267 : vector<8x128xf32>
    %270 = arith.divf %268, %269 : vector<8x128xf32>
    %271 = arith.select %2, %265, %270 : vector<8x128xi1>, vector<8x128xf32>
    %272 = vector.extract_strided_slice %271 {offsets = [0, 0], sizes = [8, 32], strides = [1, 1]} : vector<8x128xf32> to vector<8x32xf32>
    %273 = vector.extract_strided_slice %271 {offsets = [0, 32], sizes = [8, 32], strides = [1, 1]} : vector<8x128xf32> to vector<8x32xf32>
    %274 = vector.extract_strided_slice %271 {offsets = [0, 64], sizes = [8, 32], strides = [1, 1]} : vector<8x128xf32> to vector<8x32xf32>
    %275 = vector.extract_strided_slice %271 {offsets = [0, 96], sizes = [8, 32], strides = [1, 1]} : vector<8x128xf32> to vector<8x32xf32>
    %276 = arith.mulf %273, %256 : vector<8x32xf32>
    %277 = arith.mulf %272, %275 : vector<8x32xf32>
    %278 = arith.addf %276, %277 : vector<8x32xf32>
    %279 = math.tanh %278 : vector<8x32xf32>
    %280 = arith.mulf %274, %279 : vector<8x32xf32>
    %c3_i32_79 = arith.constant 3 : i32
    %c8_i32_80 = arith.constant 8 : i32
    %281 = arith.muli %c3_i32_79, %c8_i32_80 : i32
    %282 = tpu.assume_multiple %281, 8 : i32
    %283 = arith.index_cast %282 : i32 to index
    %c0_81 = arith.constant 0 : index
    %284 = vector.load %arg10[%283, %c0_81] : memref<64x128xf32, #tpu.memory_space<vmem>>, vector<8x128xf32>
    %cst_82 = arith.constant dense<0.000000e+00> : vector<8x128xf32>
    %285 = tpu.matmul %280, %206, %cst_82 {dimension_numbers = #tpu.dot_dimension_numbers<[1], [0], [0], [1], [0, 0, 1, 1], [], []>} : vector<8x32xf32>, vector<32x128xf32>, vector<8x128xf32> -> vector<8x128xf32>
    %286 = arith.addf %284, %285 : vector<8x128xf32>
    %287 = math.tanh %286 : vector<8x128xf32>
    %288 = arith.negf %286 : vector<8x128xf32>
    %289 = math.exp %288 : vector<8x128xf32>
    %cst_83 = arith.constant 1.000000e+00 : f32
    %290 = vector.broadcast %cst_83 : f32 to vector<8x128xf32>
    %291 = arith.addf %290, %289 : vector<8x128xf32>
    %292 = arith.divf %290, %291 : vector<8x128xf32>
    %293 = arith.select %2, %287, %292 : vector<8x128xi1>, vector<8x128xf32>
    %294 = vector.extract_strided_slice %293 {offsets = [0, 0], sizes = [8, 32], strides = [1, 1]} : vector<8x128xf32> to vector<8x32xf32>
    %295 = vector.extract_strided_slice %293 {offsets = [0, 32], sizes = [8, 32], strides = [1, 1]} : vector<8x128xf32> to vector<8x32xf32>
    %296 = vector.extract_strided_slice %293 {offsets = [0, 64], sizes = [8, 32], strides = [1, 1]} : vector<8x128xf32> to vector<8x32xf32>
    %297 = vector.extract_strided_slice %293 {offsets = [0, 96], sizes = [8, 32], strides = [1, 1]} : vector<8x128xf32> to vector<8x32xf32>
    %298 = arith.mulf %295, %278 : vector<8x32xf32>
    %299 = arith.mulf %294, %297 : vector<8x32xf32>
    %300 = arith.addf %298, %299 : vector<8x32xf32>
    %301 = math.tanh %300 : vector<8x32xf32>
    %302 = arith.mulf %296, %301 : vector<8x32xf32>
    %c4_i32_84 = arith.constant 4 : i32
    %c8_i32_85 = arith.constant 8 : i32
    %303 = arith.muli %c4_i32_84, %c8_i32_85 : i32
    %304 = tpu.assume_multiple %303, 8 : i32
    %305 = arith.index_cast %304 : i32 to index
    %c0_86 = arith.constant 0 : index
    %306 = vector.load %arg10[%305, %c0_86] : memref<64x128xf32, #tpu.memory_space<vmem>>, vector<8x128xf32>
    %cst_87 = arith.constant dense<0.000000e+00> : vector<8x128xf32>
    %307 = tpu.matmul %302, %206, %cst_87 {dimension_numbers = #tpu.dot_dimension_numbers<[1], [0], [0], [1], [0, 0, 1, 1], [], []>} : vector<8x32xf32>, vector<32x128xf32>, vector<8x128xf32> -> vector<8x128xf32>
    %308 = arith.addf %306, %307 : vector<8x128xf32>
    %309 = math.tanh %308 : vector<8x128xf32>
    %310 = arith.negf %308 : vector<8x128xf32>
    %311 = math.exp %310 : vector<8x128xf32>
    %cst_88 = arith.constant 1.000000e+00 : f32
    %312 = vector.broadcast %cst_88 : f32 to vector<8x128xf32>
    %313 = arith.addf %312, %311 : vector<8x128xf32>
    %314 = arith.divf %312, %313 : vector<8x128xf32>
    %315 = arith.select %2, %309, %314 : vector<8x128xi1>, vector<8x128xf32>
    %316 = vector.extract_strided_slice %315 {offsets = [0, 0], sizes = [8, 32], strides = [1, 1]} : vector<8x128xf32> to vector<8x32xf32>
    %317 = vector.extract_strided_slice %315 {offsets = [0, 32], sizes = [8, 32], strides = [1, 1]} : vector<8x128xf32> to vector<8x32xf32>
    %318 = vector.extract_strided_slice %315 {offsets = [0, 64], sizes = [8, 32], strides = [1, 1]} : vector<8x128xf32> to vector<8x32xf32>
    %319 = vector.extract_strided_slice %315 {offsets = [0, 96], sizes = [8, 32], strides = [1, 1]} : vector<8x128xf32> to vector<8x32xf32>
    %320 = arith.mulf %317, %300 : vector<8x32xf32>
    %321 = arith.mulf %316, %319 : vector<8x32xf32>
    %322 = arith.addf %320, %321 : vector<8x32xf32>
    %323 = math.tanh %322 : vector<8x32xf32>
    %324 = arith.mulf %318, %323 : vector<8x32xf32>
    %c5_i32_89 = arith.constant 5 : i32
    %c8_i32_90 = arith.constant 8 : i32
    %325 = arith.muli %c5_i32_89, %c8_i32_90 : i32
    %326 = tpu.assume_multiple %325, 8 : i32
    %327 = arith.index_cast %326 : i32 to index
    %c0_91 = arith.constant 0 : index
    %328 = vector.load %arg10[%327, %c0_91] : memref<64x128xf32, #tpu.memory_space<vmem>>, vector<8x128xf32>
    %cst_92 = arith.constant dense<0.000000e+00> : vector<8x128xf32>
    %329 = tpu.matmul %324, %206, %cst_92 {dimension_numbers = #tpu.dot_dimension_numbers<[1], [0], [0], [1], [0, 0, 1, 1], [], []>} : vector<8x32xf32>, vector<32x128xf32>, vector<8x128xf32> -> vector<8x128xf32>
    %330 = arith.addf %328, %329 : vector<8x128xf32>
    %331 = math.tanh %330 : vector<8x128xf32>
    %332 = arith.negf %330 : vector<8x128xf32>
    %333 = math.exp %332 : vector<8x128xf32>
    %cst_93 = arith.constant 1.000000e+00 : f32
    %334 = vector.broadcast %cst_93 : f32 to vector<8x128xf32>
    %335 = arith.addf %334, %333 : vector<8x128xf32>
    %336 = arith.divf %334, %335 : vector<8x128xf32>
    %337 = arith.select %2, %331, %336 : vector<8x128xi1>, vector<8x128xf32>
    %338 = vector.extract_strided_slice %337 {offsets = [0, 0], sizes = [8, 32], strides = [1, 1]} : vector<8x128xf32> to vector<8x32xf32>
    %339 = vector.extract_strided_slice %337 {offsets = [0, 32], sizes = [8, 32], strides = [1, 1]} : vector<8x128xf32> to vector<8x32xf32>
    %340 = vector.extract_strided_slice %337 {offsets = [0, 64], sizes = [8, 32], strides = [1, 1]} : vector<8x128xf32> to vector<8x32xf32>
    %341 = vector.extract_strided_slice %337 {offsets = [0, 96], sizes = [8, 32], strides = [1, 1]} : vector<8x128xf32> to vector<8x32xf32>
    %342 = arith.mulf %339, %322 : vector<8x32xf32>
    %343 = arith.mulf %338, %341 : vector<8x32xf32>
    %344 = arith.addf %342, %343 : vector<8x32xf32>
    %345 = math.tanh %344 : vector<8x32xf32>
    %346 = arith.mulf %340, %345 : vector<8x32xf32>
    %c6_i32_94 = arith.constant 6 : i32
    %c8_i32_95 = arith.constant 8 : i32
    %347 = arith.muli %c6_i32_94, %c8_i32_95 : i32
    %348 = tpu.assume_multiple %347, 8 : i32
    %349 = arith.index_cast %348 : i32 to index
    %c0_96 = arith.constant 0 : index
    %350 = vector.load %arg10[%349, %c0_96] : memref<64x128xf32, #tpu.memory_space<vmem>>, vector<8x128xf32>
    %cst_97 = arith.constant dense<0.000000e+00> : vector<8x128xf32>
    %351 = tpu.matmul %346, %206, %cst_97 {dimension_numbers = #tpu.dot_dimension_numbers<[1], [0], [0], [1], [0, 0, 1, 1], [], []>} : vector<8x32xf32>, vector<32x128xf32>, vector<8x128xf32> -> vector<8x128xf32>
    %352 = arith.addf %350, %351 : vector<8x128xf32>
    %353 = math.tanh %352 : vector<8x128xf32>
    %354 = arith.negf %352 : vector<8x128xf32>
    %355 = math.exp %354 : vector<8x128xf32>
    %cst_98 = arith.constant 1.000000e+00 : f32
    %356 = vector.broadcast %cst_98 : f32 to vector<8x128xf32>
    %357 = arith.addf %356, %355 : vector<8x128xf32>
    %358 = arith.divf %356, %357 : vector<8x128xf32>
    %359 = arith.select %2, %353, %358 : vector<8x128xi1>, vector<8x128xf32>
    %360 = vector.extract_strided_slice %359 {offsets = [0, 0], sizes = [8, 32], strides = [1, 1]} : vector<8x128xf32> to vector<8x32xf32>
    %361 = vector.extract_strided_slice %359 {offsets = [0, 32], sizes = [8, 32], strides = [1, 1]} : vector<8x128xf32> to vector<8x32xf32>
    %362 = vector.extract_strided_slice %359 {offsets = [0, 64], sizes = [8, 32], strides = [1, 1]} : vector<8x128xf32> to vector<8x32xf32>
    %363 = vector.extract_strided_slice %359 {offsets = [0, 96], sizes = [8, 32], strides = [1, 1]} : vector<8x128xf32> to vector<8x32xf32>
    %364 = arith.mulf %361, %344 : vector<8x32xf32>
    %365 = arith.mulf %360, %363 : vector<8x32xf32>
    %366 = arith.addf %364, %365 : vector<8x32xf32>
    %367 = math.tanh %366 : vector<8x32xf32>
    %368 = arith.mulf %362, %367 : vector<8x32xf32>
    %c7_i32_99 = arith.constant 7 : i32
    %c8_i32_100 = arith.constant 8 : i32
    %369 = arith.muli %c7_i32_99, %c8_i32_100 : i32
    %370 = tpu.assume_multiple %369, 8 : i32
    %371 = arith.index_cast %370 : i32 to index
    %c0_101 = arith.constant 0 : index
    %372 = vector.load %arg10[%371, %c0_101] : memref<64x128xf32, #tpu.memory_space<vmem>>, vector<8x128xf32>
    %cst_102 = arith.constant dense<0.000000e+00> : vector<8x128xf32>
    %373 = tpu.matmul %368, %206, %cst_102 {dimension_numbers = #tpu.dot_dimension_numbers<[1], [0], [0], [1], [0, 0, 1, 1], [], []>} : vector<8x32xf32>, vector<32x128xf32>, vector<8x128xf32> -> vector<8x128xf32>
    %374 = arith.addf %372, %373 : vector<8x128xf32>
    %375 = math.tanh %374 : vector<8x128xf32>
    %376 = arith.negf %374 : vector<8x128xf32>
    %377 = math.exp %376 : vector<8x128xf32>
    %cst_103 = arith.constant 1.000000e+00 : f32
    %378 = vector.broadcast %cst_103 : f32 to vector<8x128xf32>
    %379 = arith.addf %378, %377 : vector<8x128xf32>
    %380 = arith.divf %378, %379 : vector<8x128xf32>
    %381 = arith.select %2, %375, %380 : vector<8x128xi1>, vector<8x128xf32>
    %382 = vector.extract_strided_slice %381 {offsets = [0, 0], sizes = [8, 32], strides = [1, 1]} : vector<8x128xf32> to vector<8x32xf32>
    %383 = vector.extract_strided_slice %381 {offsets = [0, 32], sizes = [8, 32], strides = [1, 1]} : vector<8x128xf32> to vector<8x32xf32>
    %384 = vector.extract_strided_slice %381 {offsets = [0, 64], sizes = [8, 32], strides = [1, 1]} : vector<8x128xf32> to vector<8x32xf32>
    %385 = vector.extract_strided_slice %381 {offsets = [0, 96], sizes = [8, 32], strides = [1, 1]} : vector<8x128xf32> to vector<8x32xf32>
    %386 = arith.mulf %383, %366 : vector<8x32xf32>
    %387 = arith.mulf %382, %385 : vector<8x32xf32>
    %388 = arith.addf %386, %387 : vector<8x32xf32>
    %389 = math.tanh %388 : vector<8x32xf32>
    %390 = arith.mulf %384, %389 : vector<8x32xf32>
    %c8_i32_104 = arith.constant 8 : i32
    %c0_105 = arith.constant 0 : index
    %c0_106 = arith.constant 0 : index
    %391 = vector.load %arg7[%c0_105, %c0_106] : memref<32x4xf32, #tpu.memory_space<vmem>>, vector<32x4xf32>
    %c0_107 = arith.constant 0 : index
    %c0_108 = arith.constant 0 : index
    %392 = vector.load %arg8[%c0_107, %c0_108] : memref<1x4xf32, #tpu.memory_space<vmem>>, vector<1x4xf32>
    %393 = vector.extract_strided_slice %390 {offsets = [0, 0], sizes = [2, 32], strides = [1, 1]} : vector<8x32xf32> to vector<2x32xf32>
    %cst_109 = arith.constant dense<0.000000e+00> : vector<2x4xf32>
    %394 = tpu.matmul %393, %391, %cst_109 {dimension_numbers = #tpu.dot_dimension_numbers<[1], [0], [0], [1], [0, 0, 1, 1], [], []>} : vector<2x32xf32>, vector<32x4xf32>, vector<2x4xf32> -> vector<2x4xf32>
    %395 = vector.broadcast %392 : vector<1x4xf32> to vector<2x4xf32>
    %396 = arith.addf %394, %395 : vector<2x4xf32>
    %cst_110 = arith.constant dense<0.000000e+00> : vector<4xf32>
    %397 = vector.multi_reduction <add>, %396, %cst_110 [0] : vector<2x4xf32> to vector<4xf32>
    %398 = vector.shape_cast %397 : vector<4xf32> to vector<1x4xf32>
    %cst_111 = arith.constant 2.000000e+00 : f32
    %399 = vector.broadcast %cst_111 : f32 to vector<1x4xf32>
    %400 = arith.divf %398, %399 : vector<1x4xf32>
    %401 = vector.broadcast %400 : vector<1x4xf32> to vector<2x4xf32>
    %402 = arith.subf %396, %401 : vector<2x4xf32>
    %403 = arith.mulf %402, %402 : vector<2x4xf32>
    %cst_112 = arith.constant dense<0.000000e+00> : vector<4xf32>
    %404 = vector.multi_reduction <add>, %403, %cst_112 [0] : vector<2x4xf32> to vector<4xf32>
    %405 = vector.shape_cast %404 : vector<4xf32> to vector<1x4xf32>
    %cst_113 = arith.constant 2.000000e+00 : f32
    %406 = vector.broadcast %cst_113 : f32 to vector<1x4xf32>
    %407 = arith.divf %405, %406 : vector<1x4xf32>
    %408 = vector.broadcast %400 : vector<1x4xf32> to vector<2x4xf32>
    %409 = arith.subf %396, %408 : vector<2x4xf32>
    %cst_114 = arith.constant 9.99999974E-6 : f32
    %410 = vector.broadcast %cst_114 : f32 to vector<1x4xf32>
    %411 = arith.addf %407, %410 : vector<1x4xf32>
    %412 = math.rsqrt %411 : vector<1x4xf32>
    %413 = vector.broadcast %412 : vector<1x4xf32> to vector<2x4xf32>
    %414 = arith.mulf %409, %413 : vector<2x4xf32>
    %c0_115 = arith.constant 0 : index
    %c0_116 = arith.constant 0 : index
    %415 = vector.load %arg9[%c0_115, %c0_116] : memref<2x4xf32, #tpu.memory_space<vmem>>, vector<2x4xf32>
    tpu.vector_store %arg9[%c0_115, %c0_116], %414 {strides = array<i32>} : memref<2x4xf32, #tpu.memory_space<vmem>>, vector<2x4xf32>,
    return
  }
}

</mosaic_0001>

<bundles_post_ra>
// kernel: birnn_forward.1
= control target key start
LH: loop header
LB: loop body
LE: loop exit
PB: predicated region body
PF: predicated region fallthrough
CT: control target
= control target key end

     0   :  { %vm81_vm0 = vcmask 1043456   ;;  %vm56_vm1 = vcmask 31744   ;;  %v2676_v2 = vmov 0.0   ;;  %s3194_s0 = inlined_call_operand.vmem [shape: f32[64,4], index: 0, kind: input, shape index: {}]   ;;  %s3195_s1 = inlined_call_operand.vmem [shape: f32[4,128], index: 1, kind: input, shape index: {}]   ;;  %s3196_s2 = inlined_call_operand.vmem [shape: f32[32,128], index: 2, kind: input, shape index: {}]   ;;  %s3197_s3 = inlined_call_operand.vmem [shape: f32[1,128], index: 3, kind: input, shape index: {}]   ;;  %s3198_s4 = inlined_call_operand.vmem [shape: f32[32,128], index: 4, kind: input, shape index: {}]   ;;  %s3199_s5 = inlined_call_operand.vmem [shape: f32[32,128], index: 5, kind: input, shape index: {}]   ;;  %s3200_s6 = inlined_call_operand.vmem [shape: f32[1,128], index: 6, kind: input, shape index: {}]   ;;  %s3201_s7 = inlined_call_operand.vmem [shape: f32[32,4], index: 7, kind: input, shape index: {}]   ;;  %s3202_s8 = inlined_call_operand.vmem [shape: f32[1,4], index: 8, kind: input, shape index: {}]   ;;  %s3203_s9 = inlined_call_operand.hbm [shape: f32[2,4], index: 9, kind: output, shape index: {}]  }
   0x1   :  { %v36_v0 = vld [vmem:[%s3195_s1] sm:$0xf]  ;;  %2312 = vmatprep.subr.mxu1 %v2676_v2  ;;  %v2741_v3 = vld [vmem:[%s3196_s2 + $0x18] sm:$0xff]  ;;  %v43_v4 = vld [vmem:[%s3194_s0 + $0x8] sm:$0xff] }
   0x2   :  { %v42_v1 = vld [vmem:[%s3194_s0] sm:$0xff]  ;;  %2298 = vmatprep.subr.msk.mxu0 %vm81_vm0, %v36_v0  ;;  %v2750_v5 = vld [vmem:[%s3196_s2 + $0x10] sm:$0xff] }
   0x3   :  { %2299 = vmatpush3.msk.msra.mxu0 %vm81_vm0, %v36_v0  ;;  %2300 = vmatprep.mubr.msk.f32.mxu0 %vm56_vm1, %v42_v1 }
   0x4   :  { %14 = vsyncpa [#allocation6], 0  ;;  %2313 = vmatpush3.msra.mxu1 %v2741_v3  ;;  %2301 = vmatmul.mubr.msk.f32.vlgmr.msra.gmra.mxu0 %vm56_vm1, %v43_v4  ;;  %v2758_v6 = vld [vmem:[%s3196_s2 + $0x8] sm:$0xff]  ;;  %vm2677_vm2 = vmmov 0   ;;  %v2768_v7 = vld [vmem:[%s3196_s2] sm:$0xff]  ;;  %v33_v18 = vlaneseq  ;;  %s2679_s23 = smov 64  }
   0x5   :  { %2314 = vmatprep.subr.mxu1 %v2676_v2  ;;  %2320 = vmatprep.mubr.msk.f32.mxu1 %vm2677_vm2, %v2676_v2  ;;  %v2796_v9 = vld [vmem:[%s3197_s3] ss:$0 sm:$0xff]  ;;  %s2678_s3 = smov 32   ;;  %vm199_vm4 = vcmask 261120   ;;  %v44_v47 = vld [vmem:[%s3194_s0 + $0x10] sm:$0xff]  ;;  %v45_v48 = vld [vmem:[%s3194_s0 + $0x18] sm:$0xff] }
   0x6   :  { %2315 = vmatpush3.msra.mxu1 %v2750_v5  ;;  %2334 = vmatprep.subr.mxu0 %v2676_v2  ;;  %v2799_v19 = vand.u32 127, %v33_v18  ;;  %v46_v49 = vld [vmem:[%s3194_s0 + $0x20] sm:$0xff]  ;;  %v47_v50 = vld [vmem:[%s3194_s0 + $0x28] sm:$0xff]  ;;  %v48_v51 = vld [vmem:[%s3194_s0 + $0x30] sm:$0xff]  ;;  %vm2103_vm5 = vcmask 25600  }
   0x7   :  { %2316 = vmatprep.subr.mxu1 %v2676_v2  ;;  %2335 = vmatpush3.msra.mxu0 %v2741_v3  ;;  %v49_v52 = vld [vmem:[%s3194_s0 + $0x38] sm:$0xff] }
   0x8   :  { %2317 = vmatpush3.msra.mxu1 %v2758_v6  ;;  %2336 = vmatprep.subr.mxu0 %v2676_v2  ;;  %vm35_vm3 = vcmp.ge.s32.totalorder %v2799_v19, 96  ;;  %v2018_v19 = vld [vmem:[%s3201_s7 + $0x8] sm:$0xff] }
   0x9   :  { %2318 = vmatprep.subr.mxu1 %v2676_v2  ;;  %2337 = vmatpush3.msra.mxu0 %v2750_v5 }
   0xa   :  { %2319 = vmatpush3.msra.mxu1 %v2768_v7  ;;  %2338 = vmatprep.subr.mxu0 %v2676_v2 }
   0xb   :  { %2321 = vmatmul.mubr.f32.vlgmr.msra.gmra.mxu1 %v2676_v2  ;;  %2323 = vmatprep.subr.mxu1 %v2676_v2 }
   0xc   :  { %2324 = vmatpush3.msra.mxu1 %v2741_v3  ;;  %2331 = vmatprep.mubr.msk.f32.mxu1 %vm2677_vm2, %v2676_v2 }
   0xd   :  { %2325 = vmatprep.subr.mxu1 %v2676_v2  ;;  %2339 = vmatpush3.msra.mxu0 %v2758_v6 }
   0xe   :  { %2326 = vmatpush3.msra.mxu1 %v2750_v5  ;;  %2340 = vmatprep.subr.mxu0 %v2676_v2 }
   0xf   :  { %2327 = vmatprep.subr.mxu1 %v2676_v2  ;;  %2341 = vmatpush3.msra.mxu0 %v2768_v7 }
  0x10   :  { %2328 = vmatpush3.msra.mxu1 %v2758_v6  ;;  %2356 = vmatprep.subr.mxu0 %v2676_v2 }
  0x11   :  { %2329 = vmatprep.subr.mxu1 %v2676_v2  ;;  %2303 = vmatprep.mubr.msk.f32.mxu0 %vm56_vm1, %v44_v47 }
  0x12   :  { %2330 = vmatpush3.msra.mxu1 %v2768_v7  ;;  %2304 = vmatmul.mubr.msk.f32.gmra.mxu0 %vm56_vm1, %v45_v48 }
  0x13   :  { %2345 = vmatprep.subr.mxu1 %v2676_v2  ;;  %2306 = vmatprep.mubr.msk.f32.mxu0 %vm56_vm1, %v46_v49 }
  0x16   :  { %2307 = vmatmul.mubr.msk.f32.gmra.mxu0 %vm56_vm1, %v47_v50 }
  0x17   :  { %2309 = vmatprep.mubr.msk.f32.mxu0 %vm56_vm1, %v48_v51 }
  0x1a   :  { %2310 = vmatmul.mubr.msk.f32.gmra.mxu0 %vm56_vm1, %v49_v52 }
  0x1b   :  { %2342 = vmatprep.mubr.msk.f32.mxu0 %vm2677_vm2, %v2676_v2 }
  0xc4   :  { %v2302_v8 = vpop.f32.mrf.mxu0 }
  0xc5   :  { %v157_v32 = vadd.f32 %v2302_v8, %v2796_v9 }
  0xc6   :  { %v151_v10 = vpop.f32.mrf.mxu0 }
  0xc7   :  { %v152_v11 = vadd.f32 %v2796_v9, %v151_v10 }
  0xcb   :  { %v269_v12 = vpop.f32.mrf.mxu1 }
  0xcc   :  { %v273_v13 = vadd.f32 %v269_v12, %v152_v11 }
  0xcd   :  { %v2322_v14 = vpop.f32.mrf.mxu1 }
  0xce   :  { %v2151_v15 = vmul.f32 -1.442695, %v273_v13 }
  0xd0   :  { %2524 = vpow2.f32 %v2151_v15 }
  0xd1   :  { %2526 = vtanh.f32 %v273_v13 }
  0xd2   :  { %v2305_v57 = vpop.f32.mrf.mxu0 }
  0xd4   :  { %v161_v58 = vpop.f32.mrf.mxu0 }
  0xd5   :  { %v162_v63 = vadd.f32 %v2796_v9, %v161_v58 }
  0xd6   :  { %v2865_v59 = vpop.f32.mrf.mxu0 }
  0xd8   :  { %v2867_v60 = vpop.f32.mrf.mxu0 }
  0xda   :  { %v2869_v61 = vpop.f32.mrf.mxu0 }
  0xdc   :  { %v2871_v62 = vpop.f32.mrf.mxu0 }
  0xdd   :  { %v2525_v16 = vpop.eup %2524 }
  0xde   :  { %v278_v17 = vadd.f32 1.0, %v2525_v16  ;;  %v2527_v20 = vpop.eup %2526 }
  0xe0   :  { %2528 = vrcp.f32 %v278_v17 }
  0xed   :  { %v2529_v21 = vpop.eup %2528 }
  0xee   :  { %v281_v22 = vsel %vm35_vm3, %v2527_v20, %v2529_v21 }
  0xef   :  { %284 = vrot.lane.b32.xlu0 %v281_v22, %s2678_s3  ;;  %v282_v25 = vmul.f32 0.0, %v281_v22 }
 0x161   :  { %v285_v23 = vpop.permute.xlu0 %284 }
 0x162   :  { %v287_v24 = vmul.f32 %v285_v23, %v281_v22 }
 0x164   :  { %289 = vrot.lane.b32.xlu0 %v287_v24, %s2678_s3 }
 0x1d6   :  { %v290_v26 = vpop.permute.xlu0 %289 }
 0x1d7   :  { %v292_v27 = vadd.f32 %v290_v26, %v282_v25  ;;  %v167_v25 = vadd.f32 %v2305_v57, %v2796_v9 }
 0x1d9   :  { %2530 = vtanh.f32 %v292_v27 }
 0x1e6   :  { %v2531_v28 = vpop.eup %2530 }
 0x1e7   :  { %295 = vrot.lane.b32.xlu1 %v2531_v28, %s2678_s3 }
 0x259   :  { %v296_v29 = vpop.permute.xlu1 %295 }
 0x25a   :  { %v298_v30 = vmul.f32 %v296_v29, %v281_v22 }
 0x25c   :  { %300 = vrot.lane.b32.xlu1 %v298_v30, %s2679_s23 }
 0x2ce   :  { %v301_v31 = vpop.permute.xlu1 %300 }
 0x2cf   :  { %303 = vst.msk [vmem:[#allocation3] sm:$0xff] %vm199_vm4, %v301_v31  ;;  %2332 = vmatmul.mubr.msk.f32.vlgmr.msra.gmra.mxu1 %vm199_vm4, %v301_v31 }
 0x2d0   :  { %2346 = vmatpush3.msra.mxu1 %v2741_v3  ;;  %2353 = vmatprep.mubr.msk.f32.mxu1 %vm2677_vm2, %v2676_v2 }
 0x2d1   :  { %2347 = vmatprep.subr.mxu1 %v2676_v2 }
 0x2d2   :  { %2348 = vmatpush3.msra.mxu1 %v2750_v5 }
 0x2d3   :  { %2349 = vmatprep.subr.mxu1 %v2676_v2 }
 0x2d4   :  { %2350 = vmatpush3.msra.mxu1 %v2758_v6 }
 0x2d5   :  { %2351 = vmatprep.subr.mxu1 %v2676_v2 }
 0x2d6   :  { %2352 = vmatpush3.msra.mxu1 %v2768_v7 }
 0x2d7   :  { %2367 = vmatprep.subr.mxu1 %v2676_v2 }
 0x38f   :  { %v374_v33 = vpop.f32.mrf.mxu1 }
 0x390   :  { %v378_v34 = vadd.f32 %v374_v33, %v157_v32 }
 0x391   :  { %v2333_v35 = vpop.f32.mrf.mxu1 }
 0x392   :  { %v2153_v36 = vmul.f32 -1.442695, %v378_v34 }
 0x394   :  { %2532 = vpow2.f32 %v2153_v36 }
 0x395   :  { %2534 = vtanh.f32 %v378_v34 }
 0x3a1   :  { %v2533_v37 = vpop.eup %2532 }
 0x3a2   :  { %v383_v38 = vadd.f32 1.0, %v2533_v37  ;;  %v2535_v39 = vpop.eup %2534 }
 0x3a4   :  { %2536 = vrcp.f32 %v383_v38 }
 0x3b1   :  { %v2537_v40 = vpop.eup %2536 }
 0x3b2   :  { %v386_v41 = vsel %vm35_vm3, %v2535_v39, %v2537_v40 }
 0x3b3   :  { %389 = vrot.lane.b32.xlu0 %v386_v41, %s2678_s3  ;;  %v387_v44 = vmul.f32 %v386_v41, %v292_v27 }
 0x425   :  { %v390_v42 = vpop.permute.xlu0 %389 }
 0x426   :  { %v392_v43 = vmul.f32 %v390_v42, %v386_v41 }
 0x428   :  { %394 = vrot.lane.b32.xlu1 %v392_v43, %s2678_s3 }
 0x49a   :  { %v395_v45 = vpop.permute.xlu1 %394 }
 0x49b   :  { %v397_v46 = vadd.f32 %v395_v45, %v387_v44  ;;  %v172_v44 = vadd.f32 %v2796_v9, %v2867_v60 }
 0x49d   :  { %2538 = vtanh.f32 %v397_v46 }
 0x4aa   :  { %v2539_v53 = vpop.eup %2538 }
 0x4ab   :  { %400 = vrot.lane.b32.xlu0 %v2539_v53, %s2678_s3 }
 0x51d   :  { %v401_v54 = vpop.permute.xlu0 %400 }
 0x51e   :  { %v403_v55 = vmul.f32 %v401_v54, %v386_v41 }
 0x520   :  { %405 = vrot.lane.b32.xlu1 %v403_v55, %s2679_s23 }
 0x592   :  { %v406_v56 = vpop.permute.xlu1 %405 }
 0x593   :  { %409 = vst.msk [vmem:[#allocation3 + $0x8] sm:$0xff] %vm199_vm4, %v406_v56  ;;  %2343 = vmatmul.mubr.msk.f32.vlgmr.msra.gmra.mxu0 %vm199_vm4, %v406_v56 }
 0x594   :  { %2357 = vmatpush3.msra.mxu0 %v2741_v3  ;;  %2364 = vmatprep.mubr.msk.f32.mxu0 %vm2677_vm2, %v2676_v2 }
 0x595   :  { %2358 = vmatprep.subr.mxu0 %v2676_v2 }
 0x596   :  { %2359 = vmatpush3.msra.mxu0 %v2750_v5 }
 0x597   :  { %2360 = vmatprep.subr.mxu0 %v2676_v2 }
 0x598   :  { %2361 = vmatpush3.msra.mxu0 %v2758_v6 }
 0x599   :  { %2362 = vmatprep.subr.mxu0 %v2676_v2 }
 0x59a   :  { %2363 = vmatpush3.msra.mxu0 %v2768_v7 }
 0x59b   :  { %2378 = vmatprep.subr.mxu0 %v2676_v2 }
 0x653   :  { %v480_v0 = vpop.f32.mrf.mxu0 }
 0x654   :  { %v484_v1 = vadd.f32 %v480_v0, %v162_v63 }
 0x655   :  { %v2344_v4 = vpop.f32.mrf.mxu0 }
 0x656   :  { %v2155_v8 = vmul.f32 -1.442695, %v484_v1 }
 0x658   :  { %2540 = vpow2.f32 %v2155_v8 }
 0x659   :  { %2542 = vtanh.f32 %v484_v1 }
 0x665   :  { %v2541_v10 = vpop.eup %2540 }
 0x666   :  { %v489_v11 = vadd.f32 1.0, %v2541_v10  ;;  %v2543_v12 = vpop.eup %2542 }
 0x668   :  { %2544 = vrcp.f32 %v489_v11 }
 0x675   :  { %v2545_v13 = vpop.eup %2544 }
 0x676   :  { %v492_v14 = vsel %vm35_vm3, %v2543_v12, %v2545_v13 }
 0x677   :  { %495 = vrot.lane.b32.xlu0 %v492_v14, %s2678_s3  ;;  %v493_v17 = vmul.f32 %v492_v14, %v397_v46 }
 0x6e9   :  { %v496_v15 = vpop.permute.xlu0 %495 }
 0x6ea   :  { %v498_v16 = vmul.f32 %v496_v15, %v492_v14 }
 0x6ec   :  { %500 = vrot.lane.b32.xlu1 %v498_v16, %s2678_s3 }
 0x75e   :  { %v501_v18 = vpop.permute.xlu1 %500 }
 0x75f   :  { %v503_v20 = vadd.f32 %v501_v18, %v493_v17  ;;  %v1049_v18 = vld [vmem:[%s3198_s4 + $0x18] sm:$0xff] }
 0x761   :  { %2546 = vtanh.f32 %v503_v20 }
 0x76e   :  { %v2547_v21 = vpop.eup %2546 }
 0x76f   :  { %506 = vrot.lane.b32.xlu0 %v2547_v21, %s2678_s3 }
 0x7e1   :  { %v507_v22 = vpop.permute.xlu0 %506 }
 0x7e2   :  { %v509_v23 = vmul.f32 %v507_v22, %v492_v14 }
 0x7e4   :  { %511 = vrot.lane.b32.xlu1 %v509_v23, %s2679_s23 }
 0x856   :  { %v512_v24 = vpop.permute.xlu1 %511 }
 0x857   :  { %515 = vst.msk [vmem:[#allocation3 + $0x10] sm:$0xff] %vm199_vm4, %v512_v24  ;;  %2354 = vmatmul.mubr.msk.f32.vlgmr.msra.gmra.mxu1 %vm199_vm4, %v512_v24  ;;  %v1048_v24 = vld [vmem:[%s3198_s4 + $0x10] sm:$0xff] }
 0x858   :  { %2368 = vmatpush3.msra.mxu1 %v2741_v3  ;;  %2375 = vmatprep.mubr.msk.f32.mxu1 %vm2677_vm2, %v2676_v2 }
 0x859   :  { %2369 = vmatprep.subr.mxu1 %v2676_v2 }
 0x85a   :  { %2370 = vmatpush3.msra.mxu1 %v2750_v5 }
 0x85b   :  { %2371 = vmatprep.subr.mxu1 %v2676_v2 }
 0x85c   :  { %2372 = vmatpush3.msra.mxu1 %v2758_v6 }
 0x85d   :  { %2373 = vmatprep.subr.mxu1 %v2676_v2 }
 0x85e   :  { %2374 = vmatpush3.msra.mxu1 %v2768_v7 }
 0x85f   :  { %2389 = vmatprep.subr.mxu1 %v2676_v2 }
 0x917   :  { %v586_v26 = vpop.f32.mrf.mxu1 }
 0x918   :  { %v590_v27 = vadd.f32 %v586_v26, %v167_v25  ;;  %v1055_v25 = vld [vmem:[#allocation3] sm:$0xff]  ;;  %v1047_v26 = vld [vmem:[%s3198_s4 + $0x8] sm:$0xff] }
 0x919   :  { %v2355_v28 = vpop.f32.mrf.mxu1 }
 0x91a   :  { %v2157_v29 = vmul.f32 -1.442695, %v590_v27  ;;  %v1056_v28 = vld [vmem:[#allocation3 + $0x8] sm:$0xff] }
 0x91c   :  { %2548 = vpow2.f32 %v2157_v29  ;;  %v1057_v29 = vld [vmem:[#allocation3 + $0x10] sm:$0xff] }
 0x91d   :  { %2550 = vtanh.f32 %v590_v27  ;;  %v1046_v27 = vld [vmem:[%s3198_s4] sm:$0xff] }
 0x929   :  { %v2549_v30 = vpop.eup %2548 }
 0x92a   :  { %v595_v31 = vadd.f32 1.0, %v2549_v30  ;;  %v2551_v32 = vpop.eup %2550 }
 0x92c   :  { %2552 = vrcp.f32 %v595_v31 }
 0x939   :  { %v2553_v33 = vpop.eup %2552 }
 0x93a   :  { %v598_v34 = vsel %vm35_vm3, %v2551_v32, %v2553_v33  ;;  %v182_v33 = vadd.f32 %v2796_v9, %v2871_v62 }
 0x93b   :  { %601 = vrot.lane.b32.xlu0 %v598_v34, %s2678_s3  ;;  %v599_v37 = vmul.f32 %v598_v34, %v503_v20 }
 0x9ad   :  { %v602_v35 = vpop.permute.xlu0 %601 }
 0x9ae   :  { %v604_v36 = vmul.f32 %v602_v35, %v598_v34 }
 0x9b0   :  { %606 = vrot.lane.b32.xlu1 %v604_v36, %s2678_s3 }
 0xa22   :  { %v607_v38 = vpop.permute.xlu1 %606 }
 0xa23   :  { %v609_v39 = vadd.f32 %v607_v38, %v599_v37 }
 0xa25   :  { %2554 = vtanh.f32 %v609_v39 }
 0xa32   :  { %v2555_v40 = vpop.eup %2554 }
 0xa33   :  { %612 = vrot.lane.b32.xlu0 %v2555_v40, %s2678_s3 }
 0xaa5   :  { %v613_v41 = vpop.permute.xlu0 %612 }
 0xaa6   :  { %v615_v42 = vmul.f32 %v613_v41, %v598_v34 }
 0xaa8   :  { %617 = vrot.lane.b32.xlu1 %v615_v42, %s2679_s23 }
 0xb1a   :  { %v618_v43 = vpop.permute.xlu1 %617 }
 0xb1b   :  { %621 = vst.msk [vmem:[#allocation3 + $0x18] sm:$0xff] %vm199_vm4, %v618_v43  ;;  %2365 = vmatmul.mubr.msk.f32.vlgmr.msra.gmra.mxu0 %vm199_vm4, %v618_v43 }
 0xb1c   :  { %2379 = vmatpush3.msra.mxu0 %v2741_v3  ;;  %2386 = vmatprep.mubr.msk.f32.mxu0 %vm2677_vm2, %v2676_v2 }
 0xb1d   :  { %2380 = vmatprep.subr.mxu0 %v2676_v2 }
 0xb1e   :  { %2381 = vmatpush3.msra.mxu0 %v2750_v5 }
 0xb1f   :  { %2382 = vmatprep.subr.mxu0 %v2676_v2 }
 0xb20   :  { %2383 = vmatpush3.msra.mxu0 %v2758_v6 }
 0xb21   :  { %2384 = vmatprep.subr.mxu0 %v2676_v2 }
 0xb22   :  { %2385 = vmatpush3.msra.mxu0 %v2768_v7  ;;  %v1058_v30 = vld [vmem:[#allocation3 + $0x18] sm:$0xff] }
 0xb23   :  { %2400 = vmatprep.subr.mxu0 %v1049_v18 }
 0xbdb   :  { %v692_v45 = vpop.f32.mrf.mxu0 }
 0xbdc   :  { %v696_v46 = vadd.f32 %v692_v45, %v172_v44 }
 0xbdd   :  { %v2366_v47 = vpop.f32.mrf.mxu0 }
 0xbde   :  { %v2159_v48 = vmul.f32 -1.442695, %v696_v46 }
 0xbe0   :  { %2556 = vpow2.f32 %v2159_v48  ;;  %v2972_v48 = vld [vmem:[%s3199_s5 + $0x18] sm:$0xff] }
 0xbe1   :  { %2558 = vtanh.f32 %v696_v46 }
 0xbed   :  { %v2557_v49 = vpop.eup %2556 }
 0xbee   :  { %v701_v50 = vadd.f32 1.0, %v2557_v49  ;;  %v2559_v51 = vpop.eup %2558  ;;  %v2978_v49 = vld [vmem:[%s3199_s5 + $0x10] sm:$0xff] }
 0xbf0   :  { %2560 = vrcp.f32 %v701_v50  ;;  %v2985_v50 = vld [vmem:[%s3199_s5 + $0x8] sm:$0xff] }
 0xbfd   :  { %v2561_v52 = vpop.eup %2560 }
 0xbfe   :  { %v704_v53 = vsel %vm35_vm3, %v2559_v51, %v2561_v52  ;;  %v2992_v51 = vld [vmem:[%s3199_s5] sm:$0xff] }
 0xbff   :  { %707 = vrot.lane.b32.xlu0 %v704_v53, %s2678_s3  ;;  %v705_v56 = vmul.f32 %v704_v53, %v609_v39 }
 0xc71   :  { %v708_v54 = vpop.permute.xlu0 %707 }
 0xc72   :  { %v710_v55 = vmul.f32 %v708_v54, %v704_v53 }
 0xc74   :  { %712 = vrot.lane.b32.xlu1 %v710_v55, %s2678_s3 }
 0xce6   :  { %v713_v57 = vpop.permute.xlu1 %712 }
 0xce7   :  { %v715_v58 = vadd.f32 %v713_v57, %v705_v56  ;;  %v187_v56 = vadd.f32 %v2869_v61, %v2796_v9 }
 0xce9   :  { %2562 = vtanh.f32 %v715_v58 }
 0xcf6   :  { %v2563_v60 = vpop.eup %2562 }
 0xcf7   :  { %718 = vrot.lane.b32.xlu0 %v2563_v60, %s2678_s3 }
 0xd69   :  { %v719_v63 = vpop.permute.xlu0 %718 }
 0xd6a   :  { %v721_v0 = vmul.f32 %v719_v63, %v704_v53 }
 0xd6c   :  { %723 = vrot.lane.b32.xlu1 %v721_v0, %s2679_s23 }
 0xdde   :  { %v724_v1 = vpop.permute.xlu1 %723 }
 0xddf   :  { %727 = vst.msk [vmem:[#allocation3 + $0x20] sm:$0xff] %vm199_vm4, %v724_v1  ;;  %2376 = vmatmul.mubr.msk.f32.vlgmr.msra.gmra.mxu1 %vm199_vm4, %v724_v1  ;;  %v3029_v1 = vld [vmem:[%s3200_s6] ss:$0 sm:$0xff] }
 0xde0   :  { %2390 = vmatpush3.msra.mxu1 %v2741_v3  ;;  %2397 = vmatprep.mubr.msk.f32.mxu1 %vm2677_vm2, %v2676_v2  ;;  %v177_v3 = vadd.f32 %v2865_v59, %v2796_v9 }
 0xde1   :  { %2391 = vmatprep.subr.mxu1 %v2676_v2 }
 0xde2   :  { %2392 = vmatpush3.msra.mxu1 %v2750_v5 }
 0xde3   :  { %2393 = vmatprep.subr.mxu1 %v2676_v2 }
 0xde4   :  { %2394 = vmatpush3.msra.mxu1 %v2758_v6 }
 0xde5   :  { %2395 = vmatprep.subr.mxu1 %v2676_v2 }
 0xde6   :  { %2396 = vmatpush3.msra.mxu1 %v2768_v7  ;;  %v1059_v31 = vld [vmem:[#allocation3 + $0x20] sm:$0xff] }
 0xde7   :  { %2420 = vmatprep.subr.mxu1 %v2676_v2 }
 0xe9f   :  { %v798_v4 = vpop.f32.mrf.mxu1 }
 0xea0   :  { %v802_v8 = vadd.f32 %v798_v4, %v177_v3 }
 0xea1   :  { %v2377_v10 = vpop.f32.mrf.mxu1 }
 0xea2   :  { %v2161_v11 = vmul.f32 -1.442695, %v802_v8 }
 0xea4   :  { %2564 = vpow2.f32 %v2161_v11 }
 0xea5   :  { %2566 = vtanh.f32 %v802_v8 }
 0xeb1   :  { %v2565_v12 = vpop.eup %2564 }
 0xeb2   :  { %v807_v5 = vadd.f32 1.0, %v2565_v12  ;;  %v2567_v13 = vpop.eup %2566 }
 0xeb4   :  { %2568 = vrcp.f32 %v807_v5 }
 0xec1   :  { %v2569_v6 = vpop.eup %2568 }
 0xec2   :  { %v810_v14 = vsel %vm35_vm3, %v2567_v13, %v2569_v6 }
 0xec3   :  { %813 = vrot.lane.b32.xlu0 %v810_v14, %s2678_s3  ;;  %v811_v59 = vmul.f32 %v810_v14, %v715_v58 }
 0xf35   :  { %v814_v7 = vpop.permute.xlu0 %813 }
 0xf36   :  { %v816_v15 = vmul.f32 %v814_v7, %v810_v14 }
 0xf38   :  { %818 = vrot.lane.b32.xlu1 %v816_v15, %s2678_s3 }
 0xfaa   :  { %v819_v16 = vpop.permute.xlu1 %818 }
 0xfab   :  { %v821_v17 = vadd.f32 %v819_v16, %v811_v59 }
 0xfad   :  { %2570 = vtanh.f32 %v821_v17 }
 0xfba   :  { %v2571_v20 = vpop.eup %2570 }
 0xfbb   :  { %824 = vrot.lane.b32.xlu0 %v2571_v20, %s2678_s3 }
0x102d   :  { %v825_v21 = vpop.permute.xlu0 %824 }
0x102e   :  { %v827_v22 = vmul.f32 %v825_v21, %v810_v14 }
0x1030   :  { %829 = vrot.lane.b32.xlu1 %v827_v22, %s2679_s23 }
0x10a2   :  { %v830_v23 = vpop.permute.xlu1 %829 }
0x10a3   :  { %833 = vst.msk [vmem:[#allocation3 + $0x28] sm:$0xff] %vm199_vm4, %v830_v23  ;;  %2387 = vmatmul.mubr.msk.f32.vlgmr.msra.gmra.mxu0 %vm199_vm4, %v830_v23 }
0x10a4   :  { %2401 = vmatpush3.msra.mxu0 %v1049_v18  ;;  %2408 = vmatprep.mubr.msk.f32.mxu0 %vm199_vm4, %v1055_v25 }
0x10a5   :  { %2402 = vmatprep.subr.mxu0 %v1048_v24 }
0x10a6   :  { %2403 = vmatpush3.msra.mxu0 %v1048_v24 }
0x10a7   :  { %2404 = vmatprep.subr.mxu0 %v1047_v26 }
0x10a8   :  { %2405 = vmatpush3.msra.mxu0 %v1047_v26 }
0x10a9   :  { %2406 = vmatprep.subr.mxu0 %v1046_v27 }
0x10aa   :  { %2407 = vmatpush3.msra.mxu0 %v1046_v27  ;;  %v1060_v32 = vld [vmem:[#allocation3 + $0x28] sm:$0xff] }
0x10ab   :  { %2409 = vmatmul.mubr.msk.f32.vlgmr.msra.gmra.mxu0 %vm199_vm4, %v1056_v28  ;;  %2442 = vmatprep.subr.mxu0 %v2676_v2 }
0x10ac   :  { %2411 = vmatprep.mubr.msk.f32.mxu0 %vm199_vm4, %v1057_v29  ;;  %2443 = vmatpush3.msra.mxu0 %v2972_v48 }
0x10ad   :  { %2444 = vmatprep.subr.mxu0 %v2676_v2 }
0x10ae   :  { %2445 = vmatpush3.msra.mxu0 %v2978_v49 }
0x10af   :  { %2412 = vmatmul.mubr.msk.f32.gmra.mxu0 %vm199_vm4, %v1058_v30  ;;  %2446 = vmatprep.subr.mxu0 %v2676_v2 }
0x10b0   :  { %2414 = vmatprep.mubr.msk.f32.mxu0 %vm199_vm4, %v1059_v31  ;;  %2447 = vmatpush3.msra.mxu0 %v2985_v50 }
0x10b1   :  { %2448 = vmatprep.subr.mxu0 %v2676_v2 }
0x10b2   :  { %2449 = vmatpush3.msra.mxu0 %v2992_v51 }
0x10b3   :  { %2415 = vmatmul.mubr.msk.f32.gmra.mxu0 %vm199_vm4, %v1060_v32  ;;  %2464 = vmatprep.subr.mxu0 %v2676_v2 }
0x1163   :  { %v904_v34 = vpop.f32.mrf.mxu0 }
0x1164   :  { %v908_v35 = vadd.f32 %v904_v34, %v182_v33 }
0x1165   :  { %v2388_v36 = vpop.f32.mrf.mxu0 }
0x1166   :  { %v2163_v37 = vmul.f32 -1.442695, %v908_v35 }
0x1168   :  { %2572 = vpow2.f32 %v2163_v37 }
0x1169   :  { %2574 = vtanh.f32 %v908_v35 }
0x116b   :  { %v3024_v57 = vpop.f32.mrf.mxu0 }
0x116c   :  { %v1165_v35 = vadd.f32 %v3024_v57, %v3029_v1 }
0x116d   :  { %v1159_v0 = vpop.f32.mrf.mxu0 }
0x116e   :  { %v1160_v3 = vadd.f32 %v3029_v1, %v1159_v0 }
0x1175   :  { %v2573_v38 = vpop.eup %2572 }
0x1176   :  { %v913_v39 = vadd.f32 1.0, %v2573_v38  ;;  %v2575_v40 = vpop.eup %2574 }
0x1178   :  { %2576 = vrcp.f32 %v913_v39 }
0x1185   :  { %v2577_v41 = vpop.eup %2576 }
0x1186   :  { %v916_v42 = vsel %vm35_vm3, %v2575_v40, %v2577_v41 }
0x1187   :  { %919 = vrot.lane.b32.xlu0 %v916_v42, %s2678_s3  ;;  %v917_v62 = vmul.f32 %v916_v42, %v821_v17 }
0x11f9   :  { %v920_v43 = vpop.permute.xlu0 %919 }
0x11fa   :  { %v922_v44 = vmul.f32 %v920_v43, %v916_v42 }
0x11fc   :  { %924 = vrot.lane.b32.xlu1 %v922_v44, %s2678_s3 }
0x126e   :  { %v925_v45 = vpop.permute.xlu1 %924 }
0x126f   :  { %v2965_v46 = vadd.f32 %v925_v45, %v917_v62 }
0x1271   :  { %2578 = vtanh.f32 %v2965_v46 }
0x127e   :  { %v2579_v47 = vpop.eup %2578 }
0x127f   :  { %930 = vrot.lane.b32.xlu0 %v2579_v47, %s2678_s3 }
0x12f1   :  { %v931_v52 = vpop.permute.xlu0 %930 }
0x12f2   :  { %v933_v53 = vmul.f32 %v931_v52, %v916_v42 }
0x12f4   :  { %935 = vrot.lane.b32.xlu1 %v933_v53, %s2679_s23 }
0x1366   :  { %v936_v54 = vpop.permute.xlu1 %935 }
0x1367   :  { %939 = vst.msk [vmem:[#allocation3 + $0x30] sm:$0xff] %vm199_vm4, %v936_v54  ;;  %2398 = vmatmul.mubr.msk.f32.vlgmr.msra.gmra.mxu1 %vm199_vm4, %v936_v54 }
0x1368   :  { %2421 = vmatpush3.msra.mxu1 %v2972_v48  ;;  %2428 = vmatprep.mubr.msk.f32.mxu1 %vm2677_vm2, %v2676_v2 }
0x1369   :  { %2422 = vmatprep.subr.mxu1 %v2676_v2 }
0x136a   :  { %2423 = vmatpush3.msra.mxu1 %v2978_v49 }
0x136b   :  { %2424 = vmatprep.subr.mxu1 %v2676_v2 }
0x136c   :  { %2425 = vmatpush3.msra.mxu1 %v2985_v50 }
0x136d   :  { %2426 = vmatprep.subr.mxu1 %v2676_v2 }
0x136e   :  { %2427 = vmatpush3.msra.mxu1 %v2992_v51  ;;  %v1061_v55 = vld [vmem:[#allocation3 + $0x30] sm:$0xff] }
0x136f   :  { %2429 = vmatmul.mubr.f32.vlgmr.msra.gmra.mxu1 %v2676_v2  ;;  %2417 = vmatprep.mubr.msk.f32.mxu0 %vm199_vm4, %v1061_v55 }
0x1370   :  { %2431 = vmatprep.subr.mxu1 %v2676_v2  ;;  %2439 = vmatprep.mubr.msk.f32.mxu1 %vm2677_vm2, %v2676_v2 }
0x1371   :  { %2432 = vmatpush3.msra.mxu1 %v2972_v48 }
0x1372   :  { %2433 = vmatprep.subr.mxu1 %v2676_v2 }
0x1373   :  { %2434 = vmatpush3.msra.mxu1 %v2978_v49 }
0x1374   :  { %2435 = vmatprep.subr.mxu1 %v2676_v2 }
0x1375   :  { %2436 = vmatpush3.msra.mxu1 %v2985_v50 }
0x1376   :  { %2437 = vmatprep.subr.mxu1 %v2676_v2 }
0x1377   :  { %2438 = vmatpush3.msra.mxu1 %v2992_v51 }
0x1378   :  { %2453 = vmatprep.subr.mxu1 %v2676_v2 }
0x1427   :  { %v1010_v58 = vpop.f32.mrf.mxu1 }
0x1428   :  { %v1014_v60 = vadd.f32 %v1010_v58, %v187_v56 }
0x1429   :  { %v2399_v63 = vpop.f32.mrf.mxu1 }
0x142a   :  { %v2165_v7 = vmul.f32 -1.442695, %v1014_v60 }
0x142f   :  { %v1273_v4 = vpop.f32.mrf.mxu1 }
0x1430   :  { %v1277_v8 = vadd.f32 %v1273_v4, %v1160_v3 }
0x1431   :  { %v2430_v10 = vpop.f32.mrf.mxu1 }
0x1432   :  { %v2175_v11 = vmul.f32 -1.442695, %v1277_v8 }
0x1434   :  { %2580 = vpow2.f32 %v2175_v11 }
0x1435   :  { %2582 = vtanh.f32 %v1277_v8 }
0x1441   :  { %v2581_v12 = vpop.eup %2580 }
0x1442   :  { %v1282_v9 = vadd.f32 1.0, %v2581_v12  ;;  %v2583_v61 = vpop.eup %2582 }
0x1444   :  { %2584 = vrcp.f32 %v1282_v9 }
0x1445   :  { %2586 = vpow2.f32 %v2165_v7 }
0x1451   :  { %v2585_v5 = vpop.eup %2584 }
0x1452   :  { %v1285_v13 = vsel %vm35_vm3, %v2583_v61, %v2585_v5  ;;  %v2587_v15 = vpop.eup %2586 }
0x1453   :  { %1288 = vrot.lane.b32.xlu0 %v1285_v13, %s2678_s3  ;;  %v1286_v59 = vmul.f32 0.0, %v1285_v13  ;;  %v1019_v16 = vadd.f32 1.0, %v2587_v15 }
0x14c5   :  { %v1289_v6 = vpop.permute.xlu0 %1288 }
0x14c6   :  { %v1291_v14 = vmul.f32 %v1289_v6, %v1285_v13 }
0x14c8   :  { %1293 = vrot.lane.b32.xlu1 %v1291_v14, %s2678_s3 }
0x153a   :  { %v1294_v17 = vpop.permute.xlu1 %1293 }
0x153b   :  { %v1296_v18 = vadd.f32 %v1294_v17, %v1286_v59 }
0x153d   :  { %2588 = vtanh.f32 %v1296_v18 }
0x153e   :  { %2590 = vrcp.f32 %v1019_v16 }
0x153f   :  { %2592 = vtanh.f32 %v1014_v60  ;;  %v2413_v60 = vpop.f32.mrf.mxu0 }
0x1541   :  { %v1169_v63 = vpop.f32.mrf.mxu0 }
0x1542   :  { %v1170_v10 = vadd.f32 %v3029_v1, %v1169_v63 }
0x1543   :  { %v3079_v0 = vpop.f32.mrf.mxu0 }
0x1545   :  { %v3081_v3 = vpop.f32.mrf.mxu0 }
0x154a   :  { %v2589_v20 = vpop.eup %2588 }
0x154b   :  { %v2591_v21 = vpop.eup %2590  ;;  %1299 = vrot.lane.b32.xlu0 %v2589_v20, %s2678_s3 }
0x154c   :  { %v2593_v22 = vpop.eup %2592 }
0x154d   :  { %v1022_v23 = vsel %vm35_vm3, %v2593_v22, %v2591_v21 }
0x154e   :  { %v1023_v29 = vmul.f32 %v1022_v23, %v2965_v46 }
0x154f   :  { %1025 = vrot.lane.b32.xlu0 %v1022_v23, %s2678_s3 }
0x15bd   :  { %v1300_v24 = vpop.permute.xlu0 %1299 }
0x15be   :  { %v1302_v25 = vmul.f32 %v1300_v24, %v1285_v13  ;;  %v1175_v24 = vadd.f32 %v2413_v60, %v3029_v1 }
0x15c0   :  { %1305 = vrot.lane.b32.xlu1 %v1302_v25, %s2679_s23 }
0x15c1   :  { %v1026_v26 = vpop.permute.xlu0 %1025 }
0x15c2   :  { %v1028_v27 = vmul.f32 %v1026_v26, %v1022_v23 }
0x15c4   :  { %1030 = vrot.lane.b32.xlu0 %v1028_v27, %s2678_s3 }
0x1632   :  { %v1306_v28 = vpop.permute.xlu1 %1305 }
0x1633   :  { %2440 = vmatmul.mubr.msk.f32.vlgmr.msra.gmra.mxu1 %vm199_vm4, %v1306_v28 }
0x1634   :  { %2454 = vmatpush3.msra.mxu1 %v2972_v48  ;;  %2461 = vmatprep.mubr.msk.f32.mxu1 %vm2677_vm2, %v2676_v2 }
0x1635   :  { %2455 = vmatprep.subr.mxu1 %v2676_v2 }
0x1636   :  { %v1031_v30 = vpop.permute.xlu0 %1030  ;;  %2456 = vmatpush3.msra.mxu1 %v2978_v49 }
0x1637   :  { %v1033_v31 = vadd.f32 %v1031_v30, %v1023_v29  ;;  %2457 = vmatprep.subr.mxu1 %v2676_v2 }
0x1638   :  { %2458 = vmatpush3.msra.mxu1 %v2985_v50 }
0x1639   :  { %2594 = vtanh.f32 %v1033_v31  ;;  %2459 = vmatprep.subr.mxu1 %v2676_v2 }
0x163a   :  { %2460 = vmatpush3.msra.mxu1 %v2992_v51 }
0x163b   :  { %2475 = vmatprep.subr.mxu1 %v2676_v2 }
0x1646   :  { %v2595_v32 = vpop.eup %2594 }
0x1647   :  { %1036 = vrot.lane.b32.xlu0 %v2595_v32, %s2678_s3 }
0x16b9   :  { %v1037_v33 = vpop.permute.xlu0 %1036 }
0x16ba   :  { %v1039_v34 = vmul.f32 %v1037_v33, %v1022_v23 }
0x16bc   :  { %1041 = vrot.lane.b32.xlu0 %v1039_v34, %s2679_s23 }
0x16f3   :  { %v1375_v36 = vpop.f32.mrf.mxu1 }
0x16f4   :  { %v1379_v37 = vadd.f32 %v1375_v36, %v1165_v35 }
0x16f5   :  { %v2441_v38 = vpop.f32.mrf.mxu1 }
0x16f6   :  { %v2177_v39 = vmul.f32 -1.442695, %v1379_v37 }
0x16f8   :  { %2596 = vpow2.f32 %v2177_v39 }
0x16f9   :  { %2598 = vtanh.f32 %v1379_v37 }
0x1705   :  { %v2597_v40 = vpop.eup %2596 }
0x1706   :  { %v1384_v41 = vadd.f32 1.0, %v2597_v40  ;;  %v2599_v42 = vpop.eup %2598 }
0x1708   :  { %2600 = vrcp.f32 %v1384_v41 }
0x1715   :  { %v2601_v43 = vpop.eup %2600 }
0x1716   :  { %v1387_v44 = vsel %vm35_vm3, %v2599_v42, %v2601_v43  ;;  %v1180_v43 = vadd.f32 %v3029_v1, %v3081_v3 }
0x1717   :  { %1390 = vrot.lane.b32.xlu1 %v1387_v44, %s2678_s3  ;;  %v1388_v52 = vmul.f32 %v1387_v44, %v1296_v18 }
0x172e   :  { %v1042_v62 = vpop.permute.xlu0 %1041 }
0x172f   :  { %1045 = vst.msk [vmem:[#allocation3 + $0x38] sm:$0xff] %vm199_vm4, %v1042_v62 }
0x1736   :  { %v1062_v45 = vld [vmem:[#allocation3 + $0x38] sm:$0xff] }
0x1737   :  { %2418 = vmatmul.mubr.msk.f32.gmra.mxu0 %vm199_vm4, %v1062_v45 }
0x1738   :  { %2450 = vmatprep.mubr.msk.f32.mxu0 %vm2677_vm2, %v2676_v2 }
0x1789   :  { %v1391_v46 = vpop.permute.xlu1 %1390 }
0x178a   :  { %v1393_v47 = vmul.f32 %v1391_v46, %v1387_v44 }
0x178c   :  { %1395 = vrot.lane.b32.xlu1 %v1393_v47, %s2678_s3 }
0x17f7   :  { %v3083_v4 = vpop.f32.mrf.mxu0 }
0x17f9   :  { %v3085_v8 = vpop.f32.mrf.mxu0 }
0x17fe   :  { %v1396_v53 = vpop.permute.xlu1 %1395 }
0x17ff   :  { %v1398_v54 = vadd.f32 %v1396_v53, %v1388_v52 }
0x1801   :  { %2602 = vtanh.f32 %v1398_v54 }
0x180e   :  { %v2603_v55 = vpop.eup %2602 }
0x180f   :  { %1401 = vrot.lane.b32.xlu1 %v2603_v55, %s2678_s3 }
0x1881   :  { %v1402_v56 = vpop.permute.xlu1 %1401 }
0x1882   :  { %v1404_v57 = vmul.f32 %v1402_v56, %v1387_v44 }
0x1884   :  { %1407 = vrot.lane.b32.xlu1 %v1404_v57, %s2679_s23 }
0x18f6   :  { %v1408_v58 = vpop.permute.xlu1 %1407 }
0x18f7   :  { %2451 = vmatmul.mubr.msk.f32.vlgmr.msra.gmra.mxu0 %vm199_vm4, %v1408_v58 }
0x18f8   :  { %2465 = vmatpush3.msra.mxu0 %v2972_v48  ;;  %2472 = vmatprep.mubr.msk.f32.mxu0 %vm2677_vm2, %v2676_v2 }
0x18f9   :  { %2466 = vmatprep.subr.mxu0 %v2676_v2 }
0x18fa   :  { %2467 = vmatpush3.msra.mxu0 %v2978_v49 }
0x18fb   :  { %2468 = vmatprep.subr.mxu0 %v2676_v2 }
0x18fc   :  { %2469 = vmatpush3.msra.mxu0 %v2985_v50 }
0x18fd   :  { %2470 = vmatprep.subr.mxu0 %v2676_v2 }
0x18fe   :  { %2471 = vmatpush3.msra.mxu0 %v2992_v51 }
0x18ff   :  { %2486 = vmatprep.subr.mxu0 %v2676_v2 }
0x19b7   :  { %v1477_v11 = vpop.f32.mrf.mxu0 }
0x19b8   :  { %v1481_v12 = vadd.f32 %v1477_v11, %v1170_v10 }
0x19b9   :  { %v2452_v9 = vpop.f32.mrf.mxu0 }
0x19ba   :  { %v2179_v61 = vmul.f32 -1.442695, %v1481_v12  ;;  %v1185_v9 = vadd.f32 %v3079_v0, %v3029_v1 }
0x19bc   :  { %2604 = vpow2.f32 %v2179_v61 }
0x19bd   :  { %2606 = vtanh.f32 %v1481_v12 }
0x19c9   :  { %v2605_v5 = vpop.eup %2604 }
0x19ca   :  { %v1486_v13 = vadd.f32 1.0, %v2605_v5  ;;  %v2607_v6 = vpop.eup %2606 }
0x19cc   :  { %2608 = vrcp.f32 %v1486_v13 }
0x19d9   :  { %v2609_v14 = vpop.eup %2608 }
0x19da   :  { %v1489_v7 = vsel %vm35_vm3, %v2607_v6, %v2609_v14 }
0x19db   :  { %1492 = vrot.lane.b32.xlu0 %v1489_v7, %s2678_s3  ;;  %v1490_v16 = vmul.f32 %v1489_v7, %v1398_v54 }
0x1a4d   :  { %v1493_v15 = vpop.permute.xlu0 %1492 }
0x1a4e   :  { %v1495_v59 = vmul.f32 %v1493_v15, %v1489_v7 }
0x1a50   :  { %1497 = vrot.lane.b32.xlu1 %v1495_v59, %s2678_s3 }
0x1ac2   :  { %v1498_v17 = vpop.permute.xlu1 %1497 }
0x1ac3   :  { %v1500_v18 = vadd.f32 %v1498_v17, %v1490_v16 }
0x1ac5   :  { %2610 = vtanh.f32 %v1500_v18 }
0x1ad2   :  { %v2611_v20 = vpop.eup %2610 }
0x1ad3   :  { %1503 = vrot.lane.b32.xlu0 %v2611_v20, %s2678_s3 }
0x1b45   :  { %v1504_v21 = vpop.permute.xlu0 %1503 }
0x1b46   :  { %v1506_v22 = vmul.f32 %v1504_v21, %v1489_v7 }
0x1b48   :  { %1509 = vrot.lane.b32.xlu1 %v1506_v22, %s2679_s23  ;;  %v1190_v22 = vadd.f32 %v3029_v1, %v3085_v8 }
0x1bba   :  { %v1510_v23 = vpop.permute.xlu1 %1509 }
0x1bbb   :  { %2462 = vmatmul.mubr.msk.f32.vlgmr.msra.gmra.mxu1 %vm199_vm4, %v1510_v23 }
0x1bbc   :  { %2476 = vmatpush3.msra.mxu1 %v2972_v48  ;;  %2483 = vmatprep.mubr.msk.f32.mxu1 %vm2677_vm2, %v2676_v2 }
0x1bbd   :  { %2477 = vmatprep.subr.mxu1 %v2676_v2 }
0x1bbe   :  { %2478 = vmatpush3.msra.mxu1 %v2978_v49 }
0x1bbf   :  { %2479 = vmatprep.subr.mxu1 %v2676_v2 }
0x1bc0   :  { %2480 = vmatpush3.msra.mxu1 %v2985_v50 }
0x1bc1   :  { %2481 = vmatprep.subr.mxu1 %v2676_v2 }
0x1bc2   :  { %2482 = vmatpush3.msra.mxu1 %v2992_v51 }
0x1bc3   :  { %2497 = vmatprep.subr.mxu1 %v2676_v2 }
0x1c7b   :  { %v1579_v25 = vpop.f32.mrf.mxu1 }
0x1c7c   :  { %v1583_v26 = vadd.f32 %v1579_v25, %v1175_v24 }
0x1c7d   :  { %v2463_v27 = vpop.f32.mrf.mxu1 }
0x1c7e   :  { %v2181_v28 = vmul.f32 -1.442695, %v1583_v26 }
0x1c80   :  { %2612 = vpow2.f32 %v2181_v28 }
0x1c81   :  { %2614 = vtanh.f32 %v1583_v26 }
0x1c8d   :  { %v2613_v29 = vpop.eup %2612 }
0x1c8e   :  { %v1588_v30 = vadd.f32 1.0, %v2613_v29  ;;  %v2615_v31 = vpop.eup %2614 }
0x1c90   :  { %2616 = vrcp.f32 %v1588_v30 }
0x1c9d   :  { %v2617_v32 = vpop.eup %2616 }
0x1c9e   :  { %v1591_v33 = vsel %vm35_vm3, %v2615_v31, %v2617_v32 }
0x1c9f   :  { %1594 = vrot.lane.b32.xlu0 %v1591_v33, %s2678_s3  ;;  %v1592_v36 = vmul.f32 %v1591_v33, %v1500_v18 }
0x1d11   :  { %v1595_v34 = vpop.permute.xlu0 %1594 }
0x1d12   :  { %v1597_v35 = vmul.f32 %v1595_v34, %v1591_v33 }
0x1d14   :  { %1599 = vrot.lane.b32.xlu1 %v1597_v35, %s2678_s3 }
0x1d86   :  { %v1600_v37 = vpop.permute.xlu1 %1599 }
0x1d87   :  { %v1602_v38 = vadd.f32 %v1600_v37, %v1592_v36 }
0x1d89   :  { %2618 = vtanh.f32 %v1602_v38 }
0x1d96   :  { %v2619_v39 = vpop.eup %2618 }
0x1d97   :  { %1605 = vrot.lane.b32.xlu0 %v2619_v39, %s2678_s3 }
0x1e09   :  { %v1606_v40 = vpop.permute.xlu0 %1605 }
0x1e0a   :  { %v1608_v41 = vmul.f32 %v1606_v40, %v1591_v33  ;;  %v1195_v40 = vadd.f32 %v3083_v4, %v3029_v1 }
0x1e0c   :  { %1611 = vrot.lane.b32.xlu1 %v1608_v41, %s2679_s23 }
0x1e7e   :  { %v1612_v42 = vpop.permute.xlu1 %1611 }
0x1e7f   :  { %2473 = vmatmul.mubr.msk.f32.vlgmr.msra.gmra.mxu0 %vm199_vm4, %v1612_v42 }
0x1e80   :  { %2487 = vmatpush3.msra.mxu0 %v2972_v48  ;;  %2494 = vmatprep.mubr.msk.f32.mxu0 %vm2677_vm2, %v2676_v2 }
0x1e81   :  { %2488 = vmatprep.subr.mxu0 %v2676_v2 }
0x1e82   :  { %2489 = vmatpush3.msra.mxu0 %v2978_v49 }
0x1e83   :  { %2490 = vmatprep.subr.mxu0 %v2676_v2 }
0x1e84   :  { %2491 = vmatpush3.msra.mxu0 %v2985_v50 }
0x1e85   :  { %2492 = vmatprep.subr.mxu0 %v2676_v2 }
0x1e86   :  { %2493 = vmatpush3.msra.mxu0 %v2992_v51 }
0x1e87   :  { %2508 = vmatprep.subr.mxu0 %v2676_v2 }
0x1f3f   :  { %v1681_v44 = vpop.f32.mrf.mxu0 }
0x1f40   :  { %v1685_v62 = vadd.f32 %v1681_v44, %v1180_v43 }
0x1f41   :  { %v2474_v45 = vpop.f32.mrf.mxu0 }
0x1f42   :  { %v2183_v46 = vmul.f32 -1.442695, %v1685_v62 }
0x1f44   :  { %2620 = vpow2.f32 %v2183_v46 }
0x1f45   :  { %2622 = vtanh.f32 %v1685_v62 }
0x1f51   :  { %v2621_v47 = vpop.eup %2620 }
0x1f52   :  { %v1690_v52 = vadd.f32 1.0, %v2621_v47  ;;  %v2623_v53 = vpop.eup %2622 }
0x1f54   :  { %2624 = vrcp.f32 %v1690_v52 }
0x1f61   :  { %v2625_v54 = vpop.eup %2624 }
0x1f62   :  { %v1693_v55 = vsel %vm35_vm3, %v2623_v53, %v2625_v54 }
0x1f63   :  { %1696 = vrot.lane.b32.xlu0 %v1693_v55, %s2678_s3  ;;  %v1694_v58 = vmul.f32 %v1693_v55, %v1602_v38 }
0x1fd5   :  { %v1697_v56 = vpop.permute.xlu0 %1696 }
0x1fd6   :  { %v1699_v57 = vmul.f32 %v1697_v56, %v1693_v55  ;;  %v2020_v56 = vld [vmem:[%s3201_s7 + $0x18] sm:$0xff] }
0x1fd8   :  { %1701 = vrot.lane.b32.xlu1 %v1699_v57, %s2678_s3  ;;  %v2019_v57 = vld [vmem:[%s3201_s7 + $0x10] sm:$0xff] }
0x204a   :  { %v1702_v60 = vpop.permute.xlu1 %1701 }
0x204b   :  { %v1704_v63 = vadd.f32 %v1702_v60, %v1694_v58  ;;  %v2017_v58 = vld [vmem:[%s3201_s7] sm:$0xff]  ;;  %s2680_s7 = smov [#allocation5]  }
0x204d   :  { %2626 = vtanh.f32 %v1704_v63 }
0x205a   :  { %v2627_v3 = vpop.eup %2626 }
0x205b   :  { %1707 = vrot.lane.b32.xlu0 %v2627_v3, %s2678_s3 }
0x20cd   :  { %v1708_v10 = vpop.permute.xlu0 %1707 }
0x20ce   :  { %v1710_v11 = vmul.f32 %v1708_v10, %v1693_v55 }
0x20d0   :  { %1713 = vrot.lane.b32.xlu1 %v1710_v11, %s2679_s23  ;;  %v2190_v11 = vld [vmem:[%s3202_s8] ss:$0 sm:$0xff]  ;;  %s2133_s8 = sshll.u32 %s2680_s7, 4  ;;  %s2134_s8 = int_to_ptr.vmem [resolvable:$true] %s2133_s8 }
0x20d1   :  { %p2659_p1 = scmp.lt.s32.totalorder %s2134_s8, %s2134_s8 }
0x2142   :  { %v1714_v12 = vpop.permute.xlu1 %1713 }
0x2143   :  { %2484 = vmatmul.mubr.msk.f32.vlgmr.msra.gmra.mxu1 %vm199_vm4, %v1714_v12 }
0x2144   :  { %2498 = vmatpush3.msra.mxu1 %v2972_v48  ;;  %2505 = vmatprep.mubr.msk.f32.mxu1 %vm2677_vm2, %v2676_v2 }
0x2145   :  { %2499 = vmatprep.subr.mxu1 %v2676_v2 }
0x2146   :  { %2500 = vmatpush3.msra.mxu1 %v2978_v49 }
0x2147   :  { %2501 = vmatprep.subr.mxu1 %v2676_v2 }
0x2148   :  { %2502 = vmatpush3.msra.mxu1 %v2985_v50 }
0x2149   :  { %2503 = vmatprep.subr.mxu1 %v2676_v2 }
0x214a   :  { %2504 = vmatpush3.msra.mxu1 %v2992_v51 }
0x2203   :  { %v1783_v61 = vpop.f32.mrf.mxu1 }
0x2204   :  { %v1787_v48 = vadd.f32 %v1783_v61, %v1185_v9 }
0x2205   :  { %v2485_v5 = vpop.f32.mrf.mxu1 }
0x2206   :  { %v2185_v13 = vmul.f32 -1.442695, %v1787_v48 }
0x2208   :  { %2628 = vpow2.f32 %v2185_v13 }
0x2209   :  { %2630 = vtanh.f32 %v1787_v48 }
0x2215   :  { %v2629_v6 = vpop.eup %2628 }
0x2216   :  { %v1792_v14 = vadd.f32 1.0, %v2629_v6  ;;  %v2631_v49 = vpop.eup %2630 }
0x2218   :  { %2632 = vrcp.f32 %v1792_v14 }
0x2225   :  { %v2633_v7 = vpop.eup %2632 }
0x2226   :  { %v1795_v50 = vsel %vm35_vm3, %v2631_v49, %v2633_v7 }
0x2227   :  { %1798 = vrot.lane.b32.xlu0 %v1795_v50, %s2678_s3  ;;  %v1796_v0 = vmul.f32 %v1795_v50, %v1704_v63 }
0x2299   :  { %v1799_v51 = vpop.permute.xlu0 %1798 }
0x229a   :  { %v1801_v15 = vmul.f32 %v1799_v51, %v1795_v50 }
0x229c   :  { %1803 = vrot.lane.b32.xlu1 %v1801_v15, %s2678_s3 }
0x230e   :  { %v1804_v59 = vpop.permute.xlu1 %1803 }
0x230f   :  { %v1806_v16 = vadd.f32 %v1804_v59, %v1796_v0 }
0x2311   :  { %2634 = vtanh.f32 %v1806_v16 }
0x231e   :  { %v2635_v17 = vpop.eup %2634 }
0x231f   :  { %1809 = vrot.lane.b32.xlu0 %v2635_v17, %s2678_s3 }
0x2391   :  { %v1810_v18 = vpop.permute.xlu0 %1809 }
0x2392   :  { %v1812_v20 = vmul.f32 %v1810_v18, %v1795_v50 }
0x2394   :  { %1815 = vrot.lane.b32.xlu1 %v1812_v20, %s2679_s23 }
0x2406   :  { %v1816_v21 = vpop.permute.xlu1 %1815 }
0x2407   :  { %2495 = vmatmul.mubr.msk.f32.vlgmr.msra.gmra.mxu0 %vm199_vm4, %v1816_v21 }
0x2408   :  { %2516 = vmatprep.mubr.msk.f32.mxu0 %vm2677_vm2, %v2676_v2  ;;  %2509 = vmatpush3.msra.mxu0 %v2020_v56 }
0x2409   :  { %2510 = vmatprep.subr.mxu0 %v2676_v2 }
0x240a   :  { %2511 = vmatpush3.msra.mxu0 %v2019_v57 }
0x240b   :  { %2512 = vmatprep.subr.mxu0 %v2676_v2 }
0x240c   :  { %2513 = vmatpush3.msra.mxu0 %v2018_v19 }
0x240d   :  { %2514 = vmatprep.subr.mxu0 %v2676_v2 }
0x240e   :  { %2515 = vmatpush3.msra.mxu0 %v2017_v58 }
0x24c7   :  { %v1885_v23 = vpop.f32.mrf.mxu0 }
0x24c8   :  { %v1889_v24 = vadd.f32 %v1885_v23, %v1190_v22 }
0x24c9   :  { %v2496_v25 = vpop.f32.mrf.mxu0 }
0x24ca   :  { %v2187_v26 = vmul.f32 -1.442695, %v1889_v24 }
0x24cc   :  { %2636 = vpow2.f32 %v2187_v26 }
0x24cd   :  { %2638 = vtanh.f32 %v1889_v24 }
0x24d9   :  { %v2637_v27 = vpop.eup %2636 }
0x24da   :  { %v1894_v28 = vadd.f32 1.0, %v2637_v27  ;;  %v2639_v29 = vpop.eup %2638 }
0x24dc   :  { %2640 = vrcp.f32 %v1894_v28 }
0x24e9   :  { %v2641_v30 = vpop.eup %2640 }
0x24ea   :  { %v1897_v31 = vsel %vm35_vm3, %v2639_v29, %v2641_v30 }
0x24eb   :  { %1900 = vrot.lane.b32.xlu0 %v1897_v31, %s2678_s3  ;;  %v1898_v8 = vmul.f32 %v1897_v31, %v1806_v16 }
0x255d   :  { %v1901_v32 = vpop.permute.xlu0 %1900 }
0x255e   :  { %v1903_v33 = vmul.f32 %v1901_v32, %v1897_v31 }
0x2560   :  { %1905 = vrot.lane.b32.xlu1 %v1903_v33, %s2678_s3 }
0x25d2   :  { %v1906_v34 = vpop.permute.xlu1 %1905 }
0x25d3   :  { %v1908_v35 = vadd.f32 %v1906_v34, %v1898_v8 }
0x25d5   :  { %2642 = vtanh.f32 %v1908_v35 }
0x25e2   :  { %v2643_v36 = vpop.eup %2642 }
0x25e3   :  { %1911 = vrot.lane.b32.xlu0 %v2643_v36, %s2678_s3 }
0x2655   :  { %v1912_v37 = vpop.permute.xlu0 %1911 }
0x2656   :  { %v1914_v38 = vmul.f32 %v1912_v37, %v1897_v31 }
0x2658   :  { %1917 = vrot.lane.b32.xlu1 %v1914_v38, %s2679_s23 }
0x26ca   :  { %v1918_v39 = vpop.permute.xlu1 %1917 }
0x26cb   :  { %2506 = vmatmul.mubr.msk.f32.vlgmr.msra.gmra.mxu1 %vm199_vm4, %v1918_v39 }
0x278b   :  { %v1987_v41 = vpop.f32.mrf.mxu1 }
0x278c   :  { %v1991_v42 = vadd.f32 %v1987_v41, %v1195_v40 }
0x278d   :  { %v2507_v43 = vpop.f32.mrf.mxu1 }
0x278e   :  { %v2189_v44 = vmul.f32 -1.442695, %v1991_v42 }
0x2790   :  { %2644 = vpow2.f32 %v2189_v44 }
0x2791   :  { %2646 = vtanh.f32 %v1991_v42 }
0x279d   :  { %v2645_v62 = vpop.eup %2644 }
0x279e   :  { %v1996_v45 = vadd.f32 1.0, %v2645_v62  ;;  %v2647_v46 = vpop.eup %2646 }
0x27a0   :  { %2648 = vrcp.f32 %v1996_v45 }
0x27ad   :  { %v2649_v47 = vpop.eup %2648 }
0x27ae   :  { %v1999_v52 = vsel %vm35_vm3, %v2647_v46, %v2649_v47 }
0x27af   :  { %2002 = vrot.lane.b32.xlu0 %v1999_v52, %s2678_s3  ;;  %v2000_v1 = vmul.f32 %v1999_v52, %v1908_v35 }
0x2821   :  { %v2003_v53 = vpop.permute.xlu0 %2002 }
0x2822   :  { %v2005_v54 = vmul.f32 %v2003_v53, %v1999_v52 }
0x2824   :  { %2007 = vrot.lane.b32.xlu1 %v2005_v54, %s2678_s3 }
0x2896   :  { %v2008_v4 = vpop.permute.xlu1 %2007 }
0x2897   :  { %v2010_v55 = vadd.f32 %v2008_v4, %v2000_v1 }
0x2899   :  { %2650 = vtanh.f32 %v2010_v55 }
0x28a6   :  { %v2651_v60 = vpop.eup %2650 }
0x28a7   :  { %2013 = vrot.lane.b32.xlu0 %v2651_v60, %s2678_s3  ;;  %s2654_s3 = scalar_lea.vmem %s2134_s8, 32 }
0x28a8   :  { %p2655_p0 = scmp.ne.s32.totalorder %s2134_s8, %s2654_s3  ;;  %p2660_p2 = scmp.lt.s32.totalorder %s2654_s3, %s2654_s3 }
0x28aa   :  { %p2661_p3 = por %p2660_p2, %p2659_p1 }
0x28ac   :  { %p2662_p4 = pnand %p2661_p3, %p2655_p0 }
0x2919   :  { %v2014_v63 = vpop.permute.xlu0 %2013 }
0x291a   :  { %v2016_v3 = vmul.f32 %v2014_v63, %v1999_v52 }
0x291c   :  { %2029 = vrot.lane.b32.xlu1 %v2016_v3, %s2679_s23 }
0x298e   :  { %v2030_v10 = vpop.permute.xlu1 %2029 }
0x298f   :  { %2517 = vmatmul.mubr.msk.f32.vlgmr.msra.gmra.mxu0 %vm199_vm4, %v2030_v10 }
0x2a4f   :  { %v2099_v12 = vpop.f32.mrf.mxu0 }
0x2a50   :  { %v2100_v9 = vadd.f32 %v2190_v11, %v2099_v12 }
0x2a51   :  { %v2518_v61 = vpop.f32.mrf.mxu0 }
0x2a52   :  { %v2104_v2 = vsel %vm2103_vm5, %v2100_v9, 0.0 }
0x2a53   :  { %v2105_v48 = vrot.slane %v2104_v2, 4 }
0x2a55   :  { %v2106_v5 = vadd.f32 %v2105_v48, %v2104_v2 }
0x2a57   :  { %v2107_v13 = vrot.slane %v2106_v5, 2 }
0x2a59   :  { %v2108_v6 = vadd.f32 %v2107_v13, %v2106_v5 }
0x2a5b   :  { %v2109_v14 = vrot.slane %v2108_v6, 1 }
0x2a5d   :  { %v2110_v49 = vadd.f32 %v2109_v14, %v2108_v6 }
0x2a5f   :  { %v2112_v7 = vmul.f32 0.5, %v2110_v49 }
0x2a61   :  { %v2113_v50 = vsub.f32 %v2100_v9, %v2112_v7 }
0x2a63   :  { %v2114_v51 = vmul.f32 %v2113_v50, %v2113_v50 }
0x2a65   :  { %v2115_v15 = vsel %vm2103_vm5, %v2114_v51, 0.0 }
0x2a66   :  { %v2116_v0 = vrot.slane %v2115_v15, 4 }
0x2a68   :  { %v2117_v59 = vadd.f32 %v2116_v0, %v2115_v15 }
0x2a6a   :  { %v2118_v16 = vrot.slane %v2117_v59, 2 }
0x2a6c   :  { %v2119_v17 = vadd.f32 %v2118_v16, %v2117_v59 }
0x2a6e   :  { %v2120_v18 = vrot.slane %v2119_v17, 1 }
0x2a70   :  { %v2121_v20 = vadd.f32 %v2120_v18, %v2119_v17 }
0x2a72   :  { %v2122_v21 = vmul.f32 0.5, %v2121_v20 }
0x2a74   :  { %v2123_v22 = vadd.f32 1e-05, %v2122_v21 }
0x2a76   :  { %2652 = vrsqrt.f32 %v2123_v22 }
0x2a83   :  { %v2653_v23 = vpop.eup %2652 }
0x2a84   :  { %v2125_v24 = vmul.f32 %v2653_v23, %v2113_v50 }
0x2a86   :  { %2126 = vst.msk [vmem:[#allocation5] sm:$0x3] %vm2103_vm5, %v2125_v24 }
0x2a87   :  { %2665 = shalt.err (!%p2662_p4)
}
0x2a88   :  { %2136 = dma.vmem_to_hbm [thread:$0]  %s2134_s8, 32, %s3203_s9, [#allocation6]  }
0x2a89   :  { %2674 = dma.done.wait [#allocation6], 32  }
0x2a8a   :  { %2675 = vsyncadd [#allocation6], 4294967264 }
0x2a8b   :  { %2140 = vsyncpa [#allocation6], 1 }

</bundles_post_ra>
